<compile_context>
chip_gen: v7x
topology: tpu7x:2x2x1
jax: 0.10.0
libtpu: 0.0.40
codegen_flags: <defaults>
</compile_context>

<pallas_src>
import math

import jax
import jax.numpy as jnp
from jax import lax
from jax.experimental import pallas as pl
from jax.experimental.pallas import tpu as pltpu


def _choose_bblk(batch, seq, target_rows=256):
    """Pick how many batch elements to fold into one grid step."""
    bblk = max(1, min(batch, target_rows // max(seq, 1)))
    while batch % bblk:
        bblk -= 1
    if batch // bblk < 2:
        # Prefer >=2 grid steps (v7x megacore) when batch allows it.
        for cand in range(bblk, 0, -1):
            if batch % cand == 0 and batch // cand >= 2:
                bblk = cand
                break
    return bblk


def _make_block_kernel(bblk, seq, n_heads, d_head, apply_muP, fix_layernorm, eps):
    scale = (1.0 / d_head) if apply_muP else (1.0 / math.sqrt(d_head))
    hk = n_heads * d_head
    rows = bblk * seq
    bf16 = jnp.bfloat16

    def layernorm(x, w, b):
        if fix_layernorm:
            sq_mean = jnp.mean(x * x, axis=-1, keepdims=True)
            return x / (jnp.sqrt(sq_mean) + eps)
        mean = jnp.mean(x, axis=-1, keepdims=True)
        var = jnp.mean(jnp.square(x - mean), axis=-1, keepdims=True)
        return (x - mean) * lax.rsqrt(var + eps) * w + b

    def kernel(x_ref, ln1w_ref, ln1b_ref, wqkv_ref, bqkv_ref, wo_ref, bo_ref,
               ln2w_ref, ln2b_ref, win_ref, bin_ref, wout_ref, bout_ref,
               out_ref):
        d_model = x_ref.shape[-1]
        # (bblk, seq, d_model) -> (rows, d_model): leading-dim merge (cheap, no lane move)
        x = x_ref[...].astype(jnp.float32).reshape(rows, d_model)

        # ---- ln1 -> fused QKV projection (one bf16 MXU matmul, f32 accumulation) ----
        xn1 = layernorm(x, ln1w_ref[...], ln1b_ref[...])
        qkv = jnp.dot(xn1.astype(bf16), wqkv_ref[...],
                      preferred_element_type=jnp.float32) + bqkv_ref[...]
        q = qkv[:, 0 * hk:1 * hk]
        k = qkv[:, 1 * hk:2 * hk]
        v = qkv[:, 2 * hk:3 * hk]

        # ---- causal self-attention, batched over the folded batch dim ----
        row_id = lax.broadcasted_iota(jnp.int32, (bblk, seq, seq), 1)
        col_id = lax.broadcasted_iota(jnp.int32, (bblk, seq, seq), 2)
        causal = col_id <= row_id            # True where attention is allowed

        z_parts = []
        for h in range(n_heads):             # short static loop over heads
            sl = slice(h * d_head, (h + 1) * d_head)
            qh = q[:, sl].reshape(bblk, seq, d_head).astype(bf16)
            kh = k[:, sl].reshape(bblk, seq, d_head).astype(bf16)
            vh = v[:, sl].reshape(bblk, seq, d_head).astype(bf16)
            s = jnp.einsum('bqd,bkd->bqk', qh, kh,
                           preferred_element_type=jnp.float32) * scale
            s = jnp.where(causal, s, -jnp.inf)
            s = s - jnp.max(s, axis=-1, keepdims=True)
            e = jnp.exp(s)
            inv = pl.reciprocal(jnp.sum(e, axis=-1, keepdims=True), approx=True)
            p = e * inv
            zh = jnp.einsum('bqk,bkd->bqd', p.astype(bf16), vh,
                            preferred_element_type=jnp.float32)
            z_parts.append(zh.reshape(rows, d_head))

        # One lane-concat, then a single full-depth (K = n_heads*d_head) W_O matmul.
        z = jnp.concatenate(z_parts, axis=-1)
        attn_out = jnp.dot(z.astype(bf16), wo_ref[...],
                           preferred_element_type=jnp.float32) + bo_ref[...]
        resid_mid = x + attn_out

        # ---- ln2 -> MLP (relu) ----
        xn2 = layernorm(resid_mid, ln2w_ref[...], ln2b_ref[...])
        pre = jnp.dot(xn2.astype(bf16), win_ref[...],
                      preferred_element_type=jnp.float32) + bin_ref[...]
        post = jnp.maximum(pre, 0.0)
        mlp_out = jnp.dot(post.astype(bf16), wout_ref[...],
                          preferred_element_type=jnp.float32) + bout_ref[...]

        y = resid_mid + mlp_out
        out_ref[...] = y.reshape(bblk, seq, d_model).astype(out_ref.dtype)

    return kernel


def pack_params(params):
    """One-time weight packing + bf16 cast. Call ONCE outside the hot path."""
    n_heads, d_model, d_head = params["W_Q"].shape
    hk = n_heads * d_head
    d_mlp = params["W_in"].shape[1]
    bf16, f32 = jnp.bfloat16, jnp.float32

    def flat_proj(w):  # (H, d_model, d_head) -> (d_model, H*d_head)
        return jnp.transpose(w, (1, 0, 2)).reshape(d_model, hk)

    return dict(
        n_heads=n_heads, d_head=d_head, d_mlp=d_mlp, d_model=d_model,
        w_qkv=jnp.concatenate([flat_proj(params["W_Q"]),
                               flat_proj(params["W_K"]),
                               flat_proj(params["W_V"])], axis=-1).astype(bf16),
        b_qkv=jnp.concatenate([params["b_Q"].reshape(1, hk),
                               params["b_K"].reshape(1, hk),
                               params["b_V"].reshape(1, hk)], axis=-1).astype(f32),
        w_o=params["W_O"].reshape(hk, d_model).astype(bf16),
        b_o=params["b_O"].reshape(1, d_model).astype(f32),
        ln1_w=params["ln1_w"].reshape(1, d_model).astype(f32),
        ln1_b=params["ln1_b"].reshape(1, d_model).astype(f32),
        ln2_w=params["ln2_w"].reshape(1, d_model).astype(f32),
        ln2_b=params["ln2_b"].reshape(1, d_model).astype(f32),
        w_in=params["W_in"].astype(bf16),
        b_in=params["b_in"].reshape(1, d_mlp).astype(f32),
        w_out=params["W_out"].astype(bf16),
        b_out=params["b_out"].reshape(1, d_model).astype(f32),
    )


def transformer_block(resid_pre, packed, *, apply_muP=False,
                      fix_layernorm=False, layer_norm_eps=1e-5):
    """Pallas equivalent of TransformerBlock.forward(resid_pre)."""
    batch, seq, d_model = resid_pre.shape
    n_heads, d_head, d_mlp = packed["n_heads"], packed["d_head"], packed["d_mlp"]
    hk = n_heads * d_head

    bblk = _choose_bblk(batch, seq)
    n_blocks = batch // bblk
    rows = bblk * seq

    kernel = _make_block_kernel(bblk, seq, n_heads, d_head, apply_muP,
                                fix_layernorm, layer_norm_eps)

    def full(shape):
        # Full-array block with a constant block index -> DMA'd once, resident in VMEM.
        # NOTE: at very large d_model/d_mlp on v7x (64 MiB VMEM) these should be
        # single-buffered (pipeline_mode=pl.Buffered(1)) or the MLP tiled over a d_mlp
        # grid axis; unnecessary at these shapes, so left out for lowering robustness.
        return pl.BlockSpec(shape, lambda b, _n=len(shape): (0,) * _n)

    # ---- VMEM budget: size the scoped limit from the real footprint, clamp to chip ----
    w_bytes = 2 * (d_model * 3 * hk + hk * d_model + d_model * d_mlp + d_mlp * d_model)
    b_bytes = 4 * (3 * hk + 6 * d_model + d_mlp)
    io_bytes = 4 * rows * d_model * 2                      # in + out block
    tmp_bytes = 4 * rows * (3 * hk + 2 * d_mlp + 4 * d_model) \
        + 4 * n_heads * bblk * seq * seq                   # qkv, mlp, scores, etc.
    needed = 2 * (w_bytes + b_bytes) + 2 * io_bytes + 2 * tmp_bytes + (8 << 20)
    try:
        cap = int(pltpu.get_tpu_info().vmem_capacity_bytes)
    except Exception:
        cap = 64 << 20                                     # v7x-safe fallback
    vmem_limit = int(min(max(needed, 32 << 20), int(cap * 0.9)))

    out = pl.pallas_call(
        kernel,
        out_shape=jax.ShapeDtypeStruct((batch, seq, d_model), resid_pre.dtype),
        grid=(n_blocks,),
        in_specs=[
            pl.BlockSpec((bblk, seq, d_model), lambda b: (b, 0, 0)),  # resid_pre
            full((1, d_model)),            # ln1_w
            full((1, d_model)),            # ln1_b
            full((d_model, 3 * hk)),       # fused W_QKV (bf16)
            full((1, 3 * hk)),             # fused b_QKV
            full((hk, d_model)),           # W_O flattened (bf16)
            full((1, d_model)),            # b_O
            full((1, d_model)),            # ln2_w
            full((1, d_model)),            # ln2_b
            full((d_model, d_mlp)),        # W_in (bf16)
            full((1, d_mlp)),              # b_in
            full((d_mlp, d_model)),        # W_out (bf16)
            full((1, d_model)),            # b_out
        ],
        out_specs=pl.BlockSpec((bblk, seq, d_model), lambda b: (b, 0, 0)),
        compiler_params=pltpu.CompilerParams(
            dimension_semantics=("parallel",),   # batch-block axis: megacore on v7x
            vmem_limit_bytes=vmem_limit,
        ),
    )(resid_pre, packed["ln1_w"], packed["ln1_b"], packed["w_qkv"],
      packed["b_qkv"], packed["w_o"], packed["b_o"], packed["ln2_w"],
      packed["ln2_b"], packed["w_in"], packed["b_in"], packed["w_out"],
      packed["b_out"])
    return out


def reference_block(x, params, *, apply_muP, fix_layernorm, eps):
    """Pure-JAX mirror of the PyTorch module (f32, highest precision)."""
    P = lax.Precision.HIGHEST

    def ln(r, w, b):
        if fix_layernorm:
            sq_mean = jnp.mean(r * r, axis=-1, keepdims=True)
            return r / (jnp.sqrt(sq_mean) + eps)
        mean = jnp.mean(r, axis=-1, keepdims=True)
        var = jnp.mean(jnp.square(r - mean), axis=-1, keepdims=True)
        return (r - mean) / jnp.sqrt(var + eps) * w + b

    d_head = params["W_Q"].shape[-1]
    seq = x.shape[1]

    xn1 = ln(x, params["ln1_w"], params["ln1_b"])
    q = jnp.einsum('bsd,hdk->bshk', xn1, params["W_Q"], precision=P) + params["b_Q"]
    k = jnp.einsum('bsd,hdk->bshk', xn1, params["W_K"], precision=P) + params["b_K"]
    v = jnp.einsum('bsd,hdk->bshk', xn1, params["W_V"], precision=P) + params["b_V"]
    scores = jnp.einsum('bqhk,bphk->bhqp', q, k, precision=P)
    scores = scores / (d_head if apply_muP else math.sqrt(d_head))
    mask = jnp.triu(jnp.ones((seq, seq), dtype=bool), k=1)
    scores = jnp.where(mask, -jnp.inf, scores)
    pattern = jax.nn.softmax(scores, axis=-1)
    z = jnp.einsum('bhqp,bphk->bqhk', pattern, v, precision=P)
    attn_out = (jnp.einsum('bqhk,hkd->bqd', z, params["W_O"], precision=P)
                + params["b_O"])
    resid_mid = x + attn_out

    xn2 = ln(resid_mid, params["ln2_w"], params["ln2_b"])
    pre = jnp.einsum('bsd,dm->bsm', xn2, params["W_in"], precision=P) + params["b_in"]
    post = jax.nn.relu(pre)
    mlp_out = (jnp.einsum('bsm,md->bsd', post, params["W_out"], precision=P)
               + params["b_out"])
    return resid_mid + mlp_out


if __name__ == "__main__":
    # Small config consistent with the module.
    batch, seq = 2, 8
    d_model, n_heads, d_head, d_mlp = 128, 4, 32, 512
    n_layers = 2
    init_std = 0.02
    apply_muP = False
    fix_layernorm = False
    eps = 1e-5

    attn_std = init_std
    proj_std = init_std / math.sqrt(2 * n_layers)

    key = jax.random.PRNGKey(0)
    ks = jax.random.split(key, 8)
    params = dict(
        ln1_w=jnp.ones((d_model,), jnp.float32),
        ln1_b=jnp.zeros((d_model,), jnp.float32),
        W_Q=jax.random.normal(ks[0], (n_heads, d_model, d_head), jnp.float32) * attn_std,
        W_K=jax.random.normal(ks[1], (n_heads, d_model, d_head), jnp.float32) * attn_std,
        W_V=jax.random.normal(ks[2], (n_heads, d_model, d_head), jnp.float32) * attn_std,
        W_O=jax.random.normal(ks[3], (n_heads, d_head, d_model), jnp.float32) * proj_std,
        b_Q=jnp.zeros((n_heads, d_head), jnp.float32),
        b_K=jnp.zeros((n_heads, d_head), jnp.float32),
        b_V=jnp.zeros((n_heads, d_head), jnp.float32),
        b_O=jnp.zeros((d_model,), jnp.float32),
        ln2_w=jnp.ones((d_model,), jnp.float32),
        ln2_b=jnp.zeros((d_model,), jnp.float32),
        W_in=jax.random.normal(ks[4], (d_model, d_mlp), jnp.float32) * init_std,
        W_out=jax.random.normal(ks[5], (d_mlp, d_model), jnp.float32) * proj_std,
        b_in=jnp.zeros((d_mlp,), jnp.float32),
        b_out=jnp.zeros((d_model,), jnp.float32),
    )
    resid_pre = jax.random.normal(ks[6], (batch, seq, d_model), jnp.float32)

    packed = pack_params(params)   # one-time packing, outside the hot path
    out = transformer_block(resid_pre, packed, apply_muP=apply_muP,
                            fix_layernorm=fix_layernorm, layer_norm_eps=eps)
    out = jax.block_until_ready(out)

    ref = reference_block(resid_pre, params, apply_muP=apply_muP,
                          fix_layernorm=fix_layernorm, eps=eps)

    assert out.shape == (batch, seq, d_model)
    assert out.dtype == jnp.float32
    # Tolerance accounts for bf16 MXU operands (f32 accumulation) vs the
    # Precision.HIGHEST f32 reference; observed error is O(1e-3).
    max_err = float(jnp.max(jnp.abs(out - ref)))
    assert jnp.allclose(out, ref, rtol=1e-2, atol=1e-2), f"max_err={max_err}"
    print("KERNEL_OK")
</pallas_src>

<mosaic_0001>
module attributes {stable_mosaic.version = 11 : i64} {
  func.func @kernel(%arg0: i32, %arg1: memref<1x8x128xf32, #tpu.memory_space<vmem>>, %arg2: memref<1x128xf32, #tpu.memory_space<vmem>>, %arg3: memref<1x128xf32, #tpu.memory_space<vmem>>, %arg4: memref<128x384xbf16, #tpu.memory_space<vmem>>, %arg5: memref<1x384xf32, #tpu.memory_space<vmem>>, %arg6: memref<128x128xbf16, #tpu.memory_space<vmem>>, %arg7: memref<1x128xf32, #tpu.memory_space<vmem>>, %arg8: memref<1x128xf32, #tpu.memory_space<vmem>>, %arg9: memref<1x128xf32, #tpu.memory_space<vmem>>, %arg10: memref<128x512xbf16, #tpu.memory_space<vmem>>, %arg11: memref<1x512xf32, #tpu.memory_space<vmem>>, %arg12: memref<512x128xbf16, #tpu.memory_space<vmem>>, %arg13: memref<1x128xf32, #tpu.memory_space<vmem>>, %arg14: memref<1x8x128xf32, #tpu.memory_space<vmem>>) attributes {dimension_semantics = [#tpu.dimension_semantics<parallel>], iteration_bounds = array<i64: 2>, scalar_prefetch = 0 : i64, scratch_operands = 0 : i64, tpu.core_type = #tpu.core_type<tc>, window_params = [{transform_indices = @transform_0, window_bounds = array<i64: 1, 8, 128>}, {pipeline_mode = #tpu.pipeline_mode<synchronous>, transform_indices = @transform_1, window_bounds = array<i64: 1, 128>}, {pipeline_mode = #tpu.pipeline_mode<synchronous>, transform_indices = @transform_2, window_bounds = array<i64: 1, 128>}, {pipeline_mode = #tpu.pipeline_mode<synchronous>, transform_indices = @transform_3, window_bounds = array<i64: 128, 384>}, {pipeline_mode = #tpu.pipeline_mode<synchronous>, transform_indices = @transform_4, window_bounds = array<i64: 1, 384>}, {pipeline_mode = #tpu.pipeline_mode<synchronous>, transform_indices = @transform_5, window_bounds = array<i64: 128, 128>}, {pipeline_mode = #tpu.pipeline_mode<synchronous>, transform_indices = @transform_6, window_bounds = array<i64: 1, 128>}, {pipeline_mode = #tpu.pipeline_mode<synchronous>, transform_indices = @transform_7, window_bounds = array<i64: 1, 128>}, {pipeline_mode = #tpu.pipeline_mode<synchronous>, transform_indices = @transform_8, window_bounds = array<i64: 1, 128>}, {pipeline_mode = #tpu.pipeline_mode<synchronous>, transform_indices = @transform_9, window_bounds = array<i64: 128, 512>}, {pipeline_mode = #tpu.pipeline_mode<synchronous>, transform_indices = @transform_10, window_bounds = array<i64: 1, 512>}, {pipeline_mode = #tpu.pipeline_mode<synchronous>, transform_indices = @transform_11, window_bounds = array<i64: 512, 128>}, {pipeline_mode = #tpu.pipeline_mode<synchronous>, transform_indices = @transform_12, window_bounds = array<i64: 1, 128>}, {transform_indices = @transform_13, window_bounds = array<i64: 1, 8, 128>}]} {
    %c0 = arith.constant 0 : index
    %c0_0 = arith.constant 0 : index
    %c0_1 = arith.constant 0 : index
    %0 = vector.load %arg1[%c0, %c0_0, %c0_1] : memref<1x8x128xf32, #tpu.memory_space<vmem>>, vector<1x8x128xf32>
    %1 = vector.shape_cast %0 : vector<1x8x128xf32> to vector<8x128xf32>
    %c0_2 = arith.constant 0 : index
    %c0_3 = arith.constant 0 : index
    %2 = vector.load %arg2[%c0_2, %c0_3] : memref<1x128xf32, #tpu.memory_space<vmem>>, vector<1x128xf32>
    %c0_4 = arith.constant 0 : index
    %c0_5 = arith.constant 0 : index
    %3 = vector.load %arg3[%c0_4, %c0_5] : memref<1x128xf32, #tpu.memory_space<vmem>>, vector<1x128xf32>
    %cst = arith.constant dense<0.000000e+00> : vector<8xf32>
    %4 = vector.multi_reduction <add>, %1, %cst [1] : vector<8x128xf32> to vector<8xf32>
    %5 = vector.shape_cast %4 : vector<8xf32> to vector<8x1xf32>
    %cst_6 = arith.constant 1.280000e+02 : f32
    %6 = vector.broadcast %cst_6 : f32 to vector<8x1xf32>
    %7 = arith.divf %5, %6 : vector<8x1xf32>
    %8 = vector.broadcast %7 : vector<8x1xf32> to vector<8x128xf32>
    %9 = arith.subf %1, %8 : vector<8x128xf32>
    %10 = arith.mulf %9, %9 : vector<8x128xf32>
    %cst_7 = arith.constant dense<0.000000e+00> : vector<8xf32>
    %11 = vector.multi_reduction <add>, %10, %cst_7 [1] : vector<8x128xf32> to vector<8xf32>
    %12 = vector.shape_cast %11 : vector<8xf32> to vector<8x1xf32>
    %cst_8 = arith.constant 1.280000e+02 : f32
    %13 = vector.broadcast %cst_8 : f32 to vector<8x1xf32>
    %14 = arith.divf %12, %13 : vector<8x1xf32>
    %15 = vector.broadcast %7 : vector<8x1xf32> to vector<8x128xf32>
    %16 = arith.subf %1, %15 : vector<8x128xf32>
    %cst_9 = arith.constant 9.99999974E-6 : f32
    %17 = vector.broadcast %cst_9 : f32 to vector<8x1xf32>
    %18 = arith.addf %14, %17 : vector<8x1xf32>
    %19 = math.rsqrt %18 : vector<8x1xf32>
    %20 = vector.broadcast %19 : vector<8x1xf32> to vector<8x128xf32>
    %21 = arith.mulf %16, %20 : vector<8x128xf32>
    %22 = vector.broadcast %2 : vector<1x128xf32> to vector<8x128xf32>
    %23 = arith.mulf %21, %22 : vector<8x128xf32>
    %24 = vector.broadcast %3 : vector<1x128xf32> to vector<8x128xf32>
    %25 = arith.addf %23, %24 : vector<8x128xf32>
    %26 = arith.truncf %25 : vector<8x128xf32> to vector<8x128xbf16>
    %c0_10 = arith.constant 0 : index
    %c0_11 = arith.constant 0 : index
    %27 = vector.load %arg4[%c0_10, %c0_11] : memref<128x384xbf16, #tpu.memory_space<vmem>>, vector<128x384xbf16>
    %cst_12 = arith.constant dense<0.000000e+00> : vector<8x384xf32>
    %28 = tpu.matmul %26, %27, %cst_12 {dimension_numbers = #tpu.dot_dimension_numbers<[1], [0], [0], [1], [0, 0, 1, 1], [], []>} : vector<8x128xbf16>, vector<128x384xbf16>, vector<8x384xf32> -> vector<8x384xf32>
    %c0_13 = arith.constant 0 : index
    %c0_14 = arith.constant 0 : index
    %29 = vector.load %arg5[%c0_13, %c0_14] : memref<1x384xf32, #tpu.memory_space<vmem>>, vector<1x384xf32>
    %30 = vector.broadcast %29 : vector<1x384xf32> to vector<8x384xf32>
    %31 = arith.addf %28, %30 : vector<8x384xf32>
    %32 = vector.extract_strided_slice %31 {offsets = [0, 0], sizes = [8, 128], strides = [1, 1]} : vector<8x384xf32> to vector<8x128xf32>
    %33 = vector.extract_strided_slice %31 {offsets = [0, 128], sizes = [8, 128], strides = [1, 1]} : vector<8x384xf32> to vector<8x128xf32>
    %34 = vector.extract_strided_slice %31 {offsets = [0, 256], sizes = [8, 128], strides = [1, 1]} : vector<8x384xf32> to vector<8x128xf32>
    %35 = tpu.iota {dimensions = array<i32: 1>} : vector<1x8x8xi32>
    %36 = tpu.iota {dimensions = array<i32: 2>} : vector<1x8x8xi32>
    %37 = arith.cmpi sle, %36, %35 : vector<1x8x8xi32>
    %38 = vector.extract_strided_slice %32 {offsets = [0, 0], sizes = [8, 32], strides = [1, 1]} : vector<8x128xf32> to vector<8x32xf32>
    %39 = vector.shape_cast %38 : vector<8x32xf32> to vector<1x8x32xf32>
    %40 = arith.truncf %39 : vector<1x8x32xf32> to vector<1x8x32xbf16>
    %41 = vector.extract_strided_slice %33 {offsets = [0, 0], sizes = [8, 32], strides = [1, 1]} : vector<8x128xf32> to vector<8x32xf32>
    %42 = vector.shape_cast %41 : vector<8x32xf32> to vector<1x8x32xf32>
    %43 = arith.truncf %42 : vector<1x8x32xf32> to vector<1x8x32xbf16>
    %44 = vector.extract_strided_slice %34 {offsets = [0, 0], sizes = [8, 32], strides = [1, 1]} : vector<8x128xf32> to vector<8x32xf32>
    %45 = vector.shape_cast %44 : vector<8x32xf32> to vector<1x8x32xf32>
    %46 = arith.truncf %45 : vector<1x8x32xf32> to vector<1x8x32xbf16>
    "tpu.trace_start"() <{level = 10 : i32, message = "bqd,bkd->bqk"}> : () -> ()
    %cst_15 = arith.constant dense<0.000000e+00> : vector<1x8x8xf32>
    %47 = tpu.matmul %40, %43, %cst_15 {dimension_numbers = #tpu.dot_dimension_numbers<[2], [2], [1], [1], [0, 0, 0, 1, 1, 1], [0], [0]>} : vector<1x8x32xbf16>, vector<1x8x32xbf16>, vector<1x8x8xf32> -> vector<1x8x8xf32>
    "tpu.trace_stop"() : () -> ()
    %cst_16 = arith.constant 0.176776692 : f32
    %48 = vector.broadcast %cst_16 : f32 to vector<1x8x8xf32>
    %49 = arith.mulf %47, %48 : vector<1x8x8xf32>
    %cst_17 = arith.constant 0xFF800000 : f32
    %50 = vector.broadcast %cst_17 : f32 to vector<1x8x8xf32>
    %51 = arith.select %37, %49, %50 : vector<1x8x8xi1>, vector<1x8x8xf32>
    %cst_18 = arith.constant dense<0xFF800000> : vector<1x8xf32>
    %52 = vector.multi_reduction <maximumf>, %51, %cst_18 [2] : vector<1x8x8xf32> to vector<1x8xf32>
    %53 = vector.shape_cast %52 : vector<1x8xf32> to vector<1x8x1xf32>
    %54 = vector.broadcast %53 : vector<1x8x1xf32> to vector<1x8x8xf32>
    %55 = arith.subf %51, %54 : vector<1x8x8xf32>
    %56 = math.exp %55 : vector<1x8x8xf32>
    %cst_19 = arith.constant dense<0.000000e+00> : vector<1x8xf32>
    %57 = vector.multi_reduction <add>, %56, %cst_19 [2] : vector<1x8x8xf32> to vector<1x8xf32>
    %58 = vector.shape_cast %57 : vector<1x8xf32> to vector<1x8x1xf32>
    %59 = tpu.reciprocal %58 {approx = true} : vector<1x8x1xf32> -> vector<1x8x1xf32>
    %60 = vector.broadcast %59 : vector<1x8x1xf32> to vector<1x8x8xf32>
    %61 = arith.mulf %56, %60 : vector<1x8x8xf32>
    %62 = arith.truncf %61 : vector<1x8x8xf32> to vector<1x8x8xbf16>
    "tpu.trace_start"() <{level = 10 : i32, message = "bqk,bkd->bqd"}> : () -> ()
    %cst_20 = arith.constant dense<0.000000e+00> : vector<1x8x32xf32>
    %63 = tpu.matmul %62, %46, %cst_20 {dimension_numbers = #tpu.dot_dimension_numbers<[2], [1], [1], [2], [0, 0, 0, 1, 1, 2], [0], [0]>} : vector<1x8x8xbf16>, vector<1x8x32xbf16>, vector<1x8x32xf32> -> vector<1x8x32xf32>
    "tpu.trace_stop"() : () -> ()
    %64 = vector.shape_cast %63 : vector<1x8x32xf32> to vector<8x32xf32>
    %65 = vector.extract_strided_slice %32 {offsets = [0, 32], sizes = [8, 32], strides = [1, 1]} : vector<8x128xf32> to vector<8x32xf32>
    %66 = vector.shape_cast %65 : vector<8x32xf32> to vector<1x8x32xf32>
    %67 = arith.truncf %66 : vector<1x8x32xf32> to vector<1x8x32xbf16>
    %68 = vector.extract_strided_slice %33 {offsets = [0, 32], sizes = [8, 32], strides = [1, 1]} : vector<8x128xf32> to vector<8x32xf32>
    %69 = vector.shape_cast %68 : vector<8x32xf32> to vector<1x8x32xf32>
    %70 = arith.truncf %69 : vector<1x8x32xf32> to vector<1x8x32xbf16>
    %71 = vector.extract_strided_slice %34 {offsets = [0, 32], sizes = [8, 32], strides = [1, 1]} : vector<8x128xf32> to vector<8x32xf32>
    %72 = vector.shape_cast %71 : vector<8x32xf32> to vector<1x8x32xf32>
    %73 = arith.truncf %72 : vector<1x8x32xf32> to vector<1x8x32xbf16>
    "tpu.trace_start"() <{level = 10 : i32, message = "bqd,bkd->bqk"}> : () -> ()
    %cst_21 = arith.constant dense<0.000000e+00> : vector<1x8x8xf32>
    %74 = tpu.matmul %67, %70, %cst_21 {dimension_numbers = #tpu.dot_dimension_numbers<[2], [2], [1], [1], [0, 0, 0, 1, 1, 1], [0], [0]>} : vector<1x8x32xbf16>, vector<1x8x32xbf16>, vector<1x8x8xf32> -> vector<1x8x8xf32>
    "tpu.trace_stop"() : () -> ()
    %cst_22 = arith.constant 0.176776692 : f32
    %75 = vector.broadcast %cst_22 : f32 to vector<1x8x8xf32>
    %76 = arith.mulf %74, %75 : vector<1x8x8xf32>
    %cst_23 = arith.constant 0xFF800000 : f32
    %77 = vector.broadcast %cst_23 : f32 to vector<1x8x8xf32>
    %78 = arith.select %37, %76, %77 : vector<1x8x8xi1>, vector<1x8x8xf32>
    %cst_24 = arith.constant dense<0xFF800000> : vector<1x8xf32>
    %79 = vector.multi_reduction <maximumf>, %78, %cst_24 [2] : vector<1x8x8xf32> to vector<1x8xf32>
    %80 = vector.shape_cast %79 : vector<1x8xf32> to vector<1x8x1xf32>
    %81 = vector.broadcast %80 : vector<1x8x1xf32> to vector<1x8x8xf32>
    %82 = arith.subf %78, %81 : vector<1x8x8xf32>
    %83 = math.exp %82 : vector<1x8x8xf32>
    %cst_25 = arith.constant dense<0.000000e+00> : vector<1x8xf32>
    %84 = vector.multi_reduction <add>, %83, %cst_25 [2] : vector<1x8x8xf32> to vector<1x8xf32>
    %85 = vector.shape_cast %84 : vector<1x8xf32> to vector<1x8x1xf32>
    %86 = tpu.reciprocal %85 {approx = true} : vector<1x8x1xf32> -> vector<1x8x1xf32>
    %87 = vector.broadcast %86 : vector<1x8x1xf32> to vector<1x8x8xf32>
    %88 = arith.mulf %83, %87 : vector<1x8x8xf32>
    %89 = arith.truncf %88 : vector<1x8x8xf32> to vector<1x8x8xbf16>
    "tpu.trace_start"() <{level = 10 : i32, message = "bqk,bkd->bqd"}> : () -> ()
    %cst_26 = arith.constant dense<0.000000e+00> : vector<1x8x32xf32>
    %90 = tpu.matmul %89, %73, %cst_26 {dimension_numbers = #tpu.dot_dimension_numbers<[2], [1], [1], [2], [0, 0, 0, 1, 1, 2], [0], [0]>} : vector<1x8x8xbf16>, vector<1x8x32xbf16>, vector<1x8x32xf32> -> vector<1x8x32xf32>
    "tpu.trace_stop"() : () -> ()
    %91 = vector.shape_cast %90 : vector<1x8x32xf32> to vector<8x32xf32>
    %92 = vector.extract_strided_slice %32 {offsets = [0, 64], sizes = [8, 32], strides = [1, 1]} : vector<8x128xf32> to vector<8x32xf32>
    %93 = vector.shape_cast %92 : vector<8x32xf32> to vector<1x8x32xf32>
    %94 = arith.truncf %93 : vector<1x8x32xf32> to vector<1x8x32xbf16>
    %95 = vector.extract_strided_slice %33 {offsets = [0, 64], sizes = [8, 32], strides = [1, 1]} : vector<8x128xf32> to vector<8x32xf32>
    %96 = vector.shape_cast %95 : vector<8x32xf32> to vector<1x8x32xf32>
    %97 = arith.truncf %96 : vector<1x8x32xf32> to vector<1x8x32xbf16>
    %98 = vector.extract_strided_slice %34 {offsets = [0, 64], sizes = [8, 32], strides = [1, 1]} : vector<8x128xf32> to vector<8x32xf32>
    %99 = vector.shape_cast %98 : vector<8x32xf32> to vector<1x8x32xf32>
    %100 = arith.truncf %99 : vector<1x8x32xf32> to vector<1x8x32xbf16>
    "tpu.trace_start"() <{level = 10 : i32, message = "bqd,bkd->bqk"}> : () -> ()
    %cst_27 = arith.constant dense<0.000000e+00> : vector<1x8x8xf32>
    %101 = tpu.matmul %94, %97, %cst_27 {dimension_numbers = #tpu.dot_dimension_numbers<[2], [2], [1], [1], [0, 0, 0, 1, 1, 1], [0], [0]>} : vector<1x8x32xbf16>, vector<1x8x32xbf16>, vector<1x8x8xf32> -> vector<1x8x8xf32>
    "tpu.trace_stop"() : () -> ()
    %cst_28 = arith.constant 0.176776692 : f32
    %102 = vector.broadcast %cst_28 : f32 to vector<1x8x8xf32>
    %103 = arith.mulf %101, %102 : vector<1x8x8xf32>
    %cst_29 = arith.constant 0xFF800000 : f32
    %104 = vector.broadcast %cst_29 : f32 to vector<1x8x8xf32>
    %105 = arith.select %37, %103, %104 : vector<1x8x8xi1>, vector<1x8x8xf32>
    %cst_30 = arith.constant dense<0xFF800000> : vector<1x8xf32>
    %106 = vector.multi_reduction <maximumf>, %105, %cst_30 [2] : vector<1x8x8xf32> to vector<1x8xf32>
    %107 = vector.shape_cast %106 : vector<1x8xf32> to vector<1x8x1xf32>
    %108 = vector.broadcast %107 : vector<1x8x1xf32> to vector<1x8x8xf32>
    %109 = arith.subf %105, %108 : vector<1x8x8xf32>
    %110 = math.exp %109 : vector<1x8x8xf32>
    %cst_31 = arith.constant dense<0.000000e+00> : vector<1x8xf32>
    %111 = vector.multi_reduction <add>, %110, %cst_31 [2] : vector<1x8x8xf32> to vector<1x8xf32>
    %112 = vector.shape_cast %111 : vector<1x8xf32> to vector<1x8x1xf32>
    %113 = tpu.reciprocal %112 {approx = true} : vector<1x8x1xf32> -> vector<1x8x1xf32>
    %114 = vector.broadcast %113 : vector<1x8x1xf32> to vector<1x8x8xf32>
    %115 = arith.mulf %110, %114 : vector<1x8x8xf32>
    %116 = arith.truncf %115 : vector<1x8x8xf32> to vector<1x8x8xbf16>
    "tpu.trace_start"() <{level = 10 : i32, message = "bqk,bkd->bqd"}> : () -> ()
    %cst_32 = arith.constant dense<0.000000e+00> : vector<1x8x32xf32>
    %117 = tpu.matmul %116, %100, %cst_32 {dimension_numbers = #tpu.dot_dimension_numbers<[2], [1], [1], [2], [0, 0, 0, 1, 1, 2], [0], [0]>} : vector<1x8x8xbf16>, vector<1x8x32xbf16>, vector<1x8x32xf32> -> vector<1x8x32xf32>
    "tpu.trace_stop"() : () -> ()
    %118 = vector.shape_cast %117 : vector<1x8x32xf32> to vector<8x32xf32>
    %119 = vector.extract_strided_slice %32 {offsets = [0, 96], sizes = [8, 32], strides = [1, 1]} : vector<8x128xf32> to vector<8x32xf32>
    %120 = vector.shape_cast %119 : vector<8x32xf32> to vector<1x8x32xf32>
    %121 = arith.truncf %120 : vector<1x8x32xf32> to vector<1x8x32xbf16>
    %122 = vector.extract_strided_slice %33 {offsets = [0, 96], sizes = [8, 32], strides = [1, 1]} : vector<8x128xf32> to vector<8x32xf32>
    %123 = vector.shape_cast %122 : vector<8x32xf32> to vector<1x8x32xf32>
    %124 = arith.truncf %123 : vector<1x8x32xf32> to vector<1x8x32xbf16>
    %125 = vector.extract_strided_slice %34 {offsets = [0, 96], sizes = [8, 32], strides = [1, 1]} : vector<8x128xf32> to vector<8x32xf32>
    %126 = vector.shape_cast %125 : vector<8x32xf32> to vector<1x8x32xf32>
    %127 = arith.truncf %126 : vector<1x8x32xf32> to vector<1x8x32xbf16>
    "tpu.trace_start"() <{level = 10 : i32, message = "bqd,bkd->bqk"}> : () -> ()
    %cst_33 = arith.constant dense<0.000000e+00> : vector<1x8x8xf32>
    %128 = tpu.matmul %121, %124, %cst_33 {dimension_numbers = #tpu.dot_dimension_numbers<[2], [2], [1], [1], [0, 0, 0, 1, 1, 1], [0], [0]>} : vector<1x8x32xbf16>, vector<1x8x32xbf16>, vector<1x8x8xf32> -> vector<1x8x8xf32>
    "tpu.trace_stop"() : () -> ()
    %cst_34 = arith.constant 0.176776692 : f32
    %129 = vector.broadcast %cst_34 : f32 to vector<1x8x8xf32>
    %130 = arith.mulf %128, %129 : vector<1x8x8xf32>
    %cst_35 = arith.constant 0xFF800000 : f32
    %131 = vector.broadcast %cst_35 : f32 to vector<1x8x8xf32>
    %132 = arith.select %37, %130, %131 : vector<1x8x8xi1>, vector<1x8x8xf32>
    %cst_36 = arith.constant dense<0xFF800000> : vector<1x8xf32>
    %133 = vector.multi_reduction <maximumf>, %132, %cst_36 [2] : vector<1x8x8xf32> to vector<1x8xf32>
    %134 = vector.shape_cast %133 : vector<1x8xf32> to vector<1x8x1xf32>
    %135 = vector.broadcast %134 : vector<1x8x1xf32> to vector<1x8x8xf32>
    %136 = arith.subf %132, %135 : vector<1x8x8xf32>
    %137 = math.exp %136 : vector<1x8x8xf32>
    %cst_37 = arith.constant dense<0.000000e+00> : vector<1x8xf32>
    %138 = vector.multi_reduction <add>, %137, %cst_37 [2] : vector<1x8x8xf32> to vector<1x8xf32>
    %139 = vector.shape_cast %138 : vector<1x8xf32> to vector<1x8x1xf32>
    %140 = tpu.reciprocal %139 {approx = true} : vector<1x8x1xf32> -> vector<1x8x1xf32>
    %141 = vector.broadcast %140 : vector<1x8x1xf32> to vector<1x8x8xf32>
    %142 = arith.mulf %137, %141 : vector<1x8x8xf32>
    %143 = arith.truncf %142 : vector<1x8x8xf32> to vector<1x8x8xbf16>
    "tpu.trace_start"() <{level = 10 : i32, message = "bqk,bkd->bqd"}> : () -> ()
    %cst_38 = arith.constant dense<0.000000e+00> : vector<1x8x32xf32>
    %144 = tpu.matmul %143, %127, %cst_38 {dimension_numbers = #tpu.dot_dimension_numbers<[2], [1], [1], [2], [0, 0, 0, 1, 1, 2], [0], [0]>} : vector<1x8x8xbf16>, vector<1x8x32xbf16>, vector<1x8x32xf32> -> vector<1x8x32xf32>
    "tpu.trace_stop"() : () -> ()
    %145 = vector.shape_cast %144 : vector<1x8x32xf32> to vector<8x32xf32>
    %146 = tpu.concatenate %64, %91, %118, %145 in 1 : vector<8x32xf32>, vector<8x32xf32>, vector<8x32xf32>, vector<8x32xf32> -> vector<8x128xf32>
    %147 = arith.truncf %146 : vector<8x128xf32> to vector<8x128xbf16>
    %c0_39 = arith.constant 0 : index
    %c0_40 = arith.constant 0 : index
    %148 = vector.load %arg6[%c0_39, %c0_40] : memref<128x128xbf16, #tpu.memory_space<vmem>>, vector<128x128xbf16>
    %cst_41 = arith.constant dense<0.000000e+00> : vector<8x128xf32>
    %149 = tpu.matmul %147, %148, %cst_41 {dimension_numbers = #tpu.dot_dimension_numbers<[1], [0], [0], [1], [0, 0, 1, 1], [], []>} : vector<8x128xbf16>, vector<128x128xbf16>, vector<8x128xf32> -> vector<8x128xf32>
    %c0_42 = arith.constant 0 : index
    %c0_43 = arith.constant 0 : index
    %150 = vector.load %arg7[%c0_42, %c0_43] : memref<1x128xf32, #tpu.memory_space<vmem>>, vector<1x128xf32>
    %151 = vector.broadcast %150 : vector<1x128xf32> to vector<8x128xf32>
    %152 = arith.addf %149, %151 : vector<8x128xf32>
    %153 = arith.addf %1, %152 : vector<8x128xf32>
    %c0_44 = arith.constant 0 : index
    %c0_45 = arith.constant 0 : index
    %154 = vector.load %arg8[%c0_44, %c0_45] : memref<1x128xf32, #tpu.memory_space<vmem>>, vector<1x128xf32>
    %c0_46 = arith.constant 0 : index
    %c0_47 = arith.constant 0 : index
    %155 = vector.load %arg9[%c0_46, %c0_47] : memref<1x128xf32, #tpu.memory_space<vmem>>, vector<1x128xf32>
    %cst_48 = arith.constant dense<0.000000e+00> : vector<8xf32>
    %156 = vector.multi_reduction <add>, %153, %cst_48 [1] : vector<8x128xf32> to vector<8xf32>
    %157 = vector.shape_cast %156 : vector<8xf32> to vector<8x1xf32>
    %cst_49 = arith.constant 1.280000e+02 : f32
    %158 = vector.broadcast %cst_49 : f32 to vector<8x1xf32>
    %159 = arith.divf %157, %158 : vector<8x1xf32>
    %160 = vector.broadcast %159 : vector<8x1xf32> to vector<8x128xf32>
    %161 = arith.subf %153, %160 : vector<8x128xf32>
    %162 = arith.mulf %161, %161 : vector<8x128xf32>
    %cst_50 = arith.constant dense<0.000000e+00> : vector<8xf32>
    %163 = vector.multi_reduction <add>, %162, %cst_50 [1] : vector<8x128xf32> to vector<8xf32>
    %164 = vector.shape_cast %163 : vector<8xf32> to vector<8x1xf32>
    %cst_51 = arith.constant 1.280000e+02 : f32
    %165 = vector.broadcast %cst_51 : f32 to vector<8x1xf32>
    %166 = arith.divf %164, %165 : vector<8x1xf32>
    %167 = vector.broadcast %159 : vector<8x1xf32> to vector<8x128xf32>
    %168 = arith.subf %153, %167 : vector<8x128xf32>
    %cst_52 = arith.constant 9.99999974E-6 : f32
    %169 = vector.broadcast %cst_52 : f32 to vector<8x1xf32>
    %170 = arith.addf %166, %169 : vector<8x1xf32>
    %171 = math.rsqrt %170 : vector<8x1xf32>
    %172 = vector.broadcast %171 : vector<8x1xf32> to vector<8x128xf32>
    %173 = arith.mulf %168, %172 : vector<8x128xf32>
    %174 = vector.broadcast %154 : vector<1x128xf32> to vector<8x128xf32>
    %175 = arith.mulf %173, %174 : vector<8x128xf32>
    %176 = vector.broadcast %155 : vector<1x128xf32> to vector<8x128xf32>
    %177 = arith.addf %175, %176 : vector<8x128xf32>
    %178 = arith.truncf %177 : vector<8x128xf32> to vector<8x128xbf16>
    %c0_53 = arith.constant 0 : index
    %c0_54 = arith.constant 0 : index
    %179 = vector.load %arg10[%c0_53, %c0_54] : memref<128x512xbf16, #tpu.memory_space<vmem>>, vector<128x512xbf16>
    %cst_55 = arith.constant dense<0.000000e+00> : vector<8x512xf32>
    %180 = tpu.matmul %178, %179, %cst_55 {dimension_numbers = #tpu.dot_dimension_numbers<[1], [0], [0], [1], [0, 0, 1, 1], [], []>} : vector<8x128xbf16>, vector<128x512xbf16>, vector<8x512xf32> -> vector<8x512xf32>
    %c0_56 = arith.constant 0 : index
    %c0_57 = arith.constant 0 : index
    %181 = vector.load %arg11[%c0_56, %c0_57] : memref<1x512xf32, #tpu.memory_space<vmem>>, vector<1x512xf32>
    %182 = vector.broadcast %181 : vector<1x512xf32> to vector<8x512xf32>
    %183 = arith.addf %180, %182 : vector<8x512xf32>
    %cst_58 = arith.constant 0.000000e+00 : f32
    %184 = vector.broadcast %cst_58 : f32 to vector<8x512xf32>
    %185 = arith.maximumf %183, %184 : vector<8x512xf32>
    %186 = arith.truncf %185 : vector<8x512xf32> to vector<8x512xbf16>
    %c0_59 = arith.constant 0 : index
    %c0_60 = arith.constant 0 : index
    %187 = vector.load %arg12[%c0_59, %c0_60] : memref<512x128xbf16, #tpu.memory_space<vmem>>, vector<512x128xbf16>
    %cst_61 = arith.constant dense<0.000000e+00> : vector<8x128xf32>
    %188 = tpu.matmul %186, %187, %cst_61 {dimension_numbers = #tpu.dot_dimension_numbers<[1], [0], [0], [1], [0, 0, 1, 1], [], []>} : vector<8x512xbf16>, vector<512x128xbf16>, vector<8x128xf32> -> vector<8x128xf32>
    %c0_62 = arith.constant 0 : index
    %c0_63 = arith.constant 0 : index
    %189 = vector.load %arg13[%c0_62, %c0_63] : memref<1x128xf32, #tpu.memory_space<vmem>>, vector<1x128xf32>
    %190 = vector.broadcast %189 : vector<1x128xf32> to vector<8x128xf32>
    %191 = arith.addf %188, %190 : vector<8x128xf32>
    %192 = arith.addf %153, %191 : vector<8x128xf32>
    %193 = vector.shape_cast %192 : vector<8x128xf32> to vector<1x8x128xf32>
    %c0_64 = arith.constant 0 : index
    %c0_65 = arith.constant 0 : index
    %c0_66 = arith.constant 0 : index
    %194 = vector.load %arg14[%c0_64, %c0_65, %c0_66] : memref<1x8x128xf32, #tpu.memory_space<vmem>>, vector<1x8x128xf32>
    tpu.vector_store %arg14[%c0_64, %c0_65, %c0_66], %193 {strides = array<i32>} : memref<1x8x128xf32, #tpu.memory_space<vmem>>, vector<1x8x128xf32>,
    return
  }
  func.func @transform_0(%arg0: i32) -> (i32, i32, i32) {
    %c0_i32 = arith.constant 0 : i32
    %c0_i32_0 = arith.constant 0 : i32
    %c0_i32_1 = arith.constant 0 : i32
    return %arg0, %c0_i32, %c0_i32_0 : i32, i32, i32
  }
  func.func @transform_1(%arg0: i32) -> (i32, i32) {
    %c0_i32 = arith.constant 0 : i32
    %c0_i32_0 = arith.constant 0 : i32
    %c0_i32_1 = arith.constant 0 : i32
    return %c0_i32, %c0_i32_0 : i32, i32
  }
  func.func @transform_2(%arg0: i32) -> (i32, i32) {
    %c0_i32 = arith.constant 0 : i32
    %c0_i32_0 = arith.constant 0 : i32
    %c0_i32_1 = arith.constant 0 : i32
    return %c0_i32, %c0_i32_0 : i32, i32
  }
  func.func @transform_3(%arg0: i32) -> (i32, i32) {
    %c0_i32 = arith.constant 0 : i32
    %c0_i32_0 = arith.constant 0 : i32
    %c0_i32_1 = arith.constant 0 : i32
    return %c0_i32, %c0_i32_0 : i32, i32
  }
  func.func @transform_4(%arg0: i32) -> (i32, i32) {
    %c0_i32 = arith.constant 0 : i32
    %c0_i32_0 = arith.constant 0 : i32
    %c0_i32_1 = arith.constant 0 : i32
    return %c0_i32, %c0_i32_0 : i32, i32
  }
  func.func @transform_5(%arg0: i32) -> (i32, i32) {
    %c0_i32 = arith.constant 0 : i32
    %c0_i32_0 = arith.constant 0 : i32
    %c0_i32_1 = arith.constant 0 : i32
    return %c0_i32, %c0_i32_0 : i32, i32
  }
  func.func @transform_6(%arg0: i32) -> (i32, i32) {
    %c0_i32 = arith.constant 0 : i32
    %c0_i32_0 = arith.constant 0 : i32
    %c0_i32_1 = arith.constant 0 : i32
    return %c0_i32, %c0_i32_0 : i32, i32
  }
  func.func @transform_7(%arg0: i32) -> (i32, i32) {
    %c0_i32 = arith.constant 0 : i32
    %c0_i32_0 = arith.constant 0 : i32
    %c0_i32_1 = arith.constant 0 : i32
    return %c0_i32, %c0_i32_0 : i32, i32
  }
  func.func @transform_8(%arg0: i32) -> (i32, i32) {
    %c0_i32 = arith.constant 0 : i32
    %c0_i32_0 = arith.constant 0 : i32
    %c0_i32_1 = arith.constant 0 : i32
    return %c0_i32, %c0_i32_0 : i32, i32
  }
  func.func @transform_9(%arg0: i32) -> (i32, i32) {
    %c0_i32 = arith.constant 0 : i32
    %c0_i32_0 = arith.constant 0 : i32
    %c0_i32_1 = arith.constant 0 : i32
    return %c0_i32, %c0_i32_0 : i32, i32
  }
  func.func @transform_10(%arg0: i32) -> (i32, i32) {
    %c0_i32 = arith.constant 0 : i32
    %c0_i32_0 = arith.constant 0 : i32
    %c0_i32_1 = arith.constant 0 : i32
    return %c0_i32, %c0_i32_0 : i32, i32
  }
  func.func @transform_11(%arg0: i32) -> (i32, i32) {
    %c0_i32 = arith.constant 0 : i32
    %c0_i32_0 = arith.constant 0 : i32
    %c0_i32_1 = arith.constant 0 : i32
    return %c0_i32, %c0_i32_0 : i32, i32
  }
  func.func @transform_12(%arg0: i32) -> (i32, i32) {
    %c0_i32 = arith.constant 0 : i32
    %c0_i32_0 = arith.constant 0 : i32
    %c0_i32_1 = arith.constant 0 : i32
    return %c0_i32, %c0_i32_0 : i32, i32
  }
  func.func @transform_13(%arg0: i32) -> (i32, i32, i32) {
    %c0_i32 = arith.constant 0 : i32
    %c0_i32_0 = arith.constant 0 : i32
    %c0_i32_1 = arith.constant 0 : i32
    return %arg0, %c0_i32, %c0_i32_0 : i32, i32, i32
  }
}

</mosaic_0001>

<bundles_post_ra>
// kernel: tpu_custom_call.1
= control target key start
LH: loop header
LB: loop body
LE: loop exit
PB: predicated region body
PF: predicated region fallthrough
CT: control target
= control target key end

     0   :  { %s3639_s0 = inlined_call_operand.hbm [shape: f32[2,8,128], index: 0, kind: input, shape index: {}]   ;;  %s3640_s1 = inlined_call_operand.hbm [shape: f32[1,128], index: 1, kind: input, shape index: {}]   ;;  %s3641_s2 = inlined_call_operand.hbm [shape: f32[1,128], index: 2, kind: input, shape index: {}]   ;;  %s3642_s3 = inlined_call_operand.hbm [shape: bf16[128,384], index: 3, kind: input, shape index: {}]   ;;  %s3643_s4 = inlined_call_operand.vmem [shape: f32[1,384], index: 4, kind: input, shape index: {}]   ;;  %s3644_s5 = inlined_call_operand.hbm [shape: bf16[128,128], index: 5, kind: input, shape index: {}]   ;;  %s3645_s6 = inlined_call_operand.vmem [shape: f32[1,128], index: 6, kind: input, shape index: {}]   ;;  %s3646_s7 = inlined_call_operand.vmem [shape: f32[1,128], index: 7, kind: input, shape index: {}]   ;;  %s3647_s8 = inlined_call_operand.vmem [shape: f32[1,128], index: 8, kind: input, shape index: {}]   ;;  %s3648_s9 = inlined_call_operand.hbm [shape: bf16[128,512], index: 9, kind: input, shape index: {}]   ;;  %s3649_s10 = inlined_call_operand.vmem [shape: f32[1,512], index: 10, kind: input, shape index: {}]   ;;  %s3650_s11 = inlined_call_operand.hbm [shape: bf16[512,128], index: 11, kind: input, shape index: {}]   ;;  %s3651_s12 = inlined_call_operand.vmem [shape: f32[1,128], index: 12, kind: input, shape index: {}]   ;;  %s3652_s13 = inlined_call_operand.hbm [shape: f32[2,8,128], index: 13, kind: output, shape index: {}]  }
   0x1   :  { %3657 = sst [smem:[#allocation20_spill]] %s3640_s1 }
   0x2   :  { %3658 = sst [smem:[#allocation21_spill]] %s3642_s3 }
   0x3   :  { %3659 = sst [smem:[#allocation22_spill]] %s3646_s7 }
   0x4   :  { %3660 = sst [smem:[#allocation23_spill]] %s3647_s8 }
   0x5   :  { %3661 = sst [smem:[#allocation24_spill]] %s3649_s10 }
   0x6   :  { %3662 = sst [smem:[#allocation25_spill]] %s3651_s12 }
   0x7   :  { %3663 = sst [smem:[#allocation26_spill]] %s3652_s13 }
   0x8   :  { %18 = vsyncpa [#allocation3], 0 }
   0x9   :  { %20 = vsyncpa [#allocation3 + $0x1], 0 }
   0xa   :  { %21 = vsyncpa [#allocation6], 0 }
   0xb   :  { %22 = vsyncpa [#allocation9], 0 }
   0xc   :  { %23 = vsyncpa [#allocation12], 0 }
   0xd   :  { %24 = vsyncpa [#allocation4], 0 }
   0xe   :  { %26 = vsyncpa [#allocation4 + $0x1], 0  ;;  %s3159_s25 = smov 0   ;;  %s3161_s26 = smov 0  }
   0xf   :  { %s3163_s27 = smov 0   ;;  %s3165_s28 = smov 0  }
  0x10 LB: > { %s3069_s29 = smov [#allocation5]   ;;  %s3180_s14 = sadd.s32 4294967295, %s3067_s28   ;;  %s3067_s28 = sphi %s3165_s28, %s3693_s28   ;;  %s3063_s27 = sphi %s3163_s27, %s3692_s27   ;;  %s3059_s26 = sphi %s3161_s26, %s3691_s26   ;;  %s3055_s25 = sphi %s3159_s25, %s3690_s25  }
  0x11   : > { %s354_s30 = sshll.u32 %s3069_s29, 4  ;;  %p2233_p0 = scmp.ge.s32.totalorder %s3067_s28, 1  ;;  %s3185_s30 = int_to_ptr.vmem [resolvable:$true] %s354_s30 }
  0x12   : > { %p3654_p1 = scmp.eq.s32.totalorder %s3180_s14, 0  ;;  %p341_p2 = scmp.lt.s32.totalorder %s3067_s28, 3 }
  0x13   : > { %s3070_s16 = smov [#allocation8]   ;;  %s3071_s19 = smov [#allocation11]  }
  0x14   : > { %p3187_p3 = pnand %p2233_p0, %p341_p2  ;;  %s375_s17 = sshll.u32 %s3070_s16, 4  ;;  %s3194_s17 = int_to_ptr.vmem [resolvable:$true] %s375_s17 }
  0x15   : > { %s413_s20 = sshll.u32 %s3071_s19, 4  ;;  %s3666_s1 = sld [smem:[#allocation20_spill]]  ;;  %s3202_s20 = int_to_ptr.vmem [resolvable:$true] %s413_s20 }
  0x16   : > { %s3664_s15 = scalar_select %p3187_p3, 1, 0 }
  0x17   : > { %p2560_p5 = pneg %p3187_p3 }
  0x19   : > { %p3198_p6 = pnand %p2560_p5, %p3654_p1 }
  0x1b   : > { %s2791_s23 = scalar_lea.hbm %s3666_s1, 16  ;;  %p3212_p8 = pneg %p3198_p6 }
  0x1c   : > { %p2792_p7 = scmp.ne.s32.totalorder %s3666_s1, %s2791_s23  ;;  %p2798_p11 = scmp.lt.u32.totalorder %s2791_s23, %s3666_s1 }
  0x1e   : > { %p2794_p9 = pnand %p3212_p8, %p2792_p7 }
  0x20   : > { %p2795_p10 = pneg %p2794_p9 }
  0x22   : > { %p2800_p12 = pnand %p2798_p11, %p2795_p10 }
  0x24   : > { %2803 = shalt.err (!%p2800_p12)
}
  0x25   : > { %s2804_s21 = scalar_lea.vmem %s3185_s30, 16  ;;  %s2811_s22 = scalar_lea.vmem %s3185_s30, 32 }
  0x26   : > { %p2805_p13 = scmp.ne.s32.totalorder %s3185_s30, %s2804_s21  ;;  %p2812_p5 = scmp.lt.s32.totalorder %s3185_s30, %s3185_s30 }
  0x27   : > { %p2813_p7 = scmp.lt.s32.totalorder %s2811_s22, %s2804_s21 }
  0x28   : > { %p2807_p0 = pnand %p2805_p13, %p3212_p8 }
  0x29   : > { %p2814_p9 = por %p2813_p7, %p2812_p5 }
  0x2a   : > { %p2808_p2 = pneg %p2807_p0 }
  0x2c   : > { %p2815_p4 = pnand %p2814_p9, %p2808_p2 }
  0x2e   : > { %2818 = shalt.err (!%p2815_p4)
}
  0x2f   : > { %2563 = dma.hbm_to_vmem [thread:$0]  (!%p3198_p6), %s3666_s1, 16, %s3185_s30, [#allocation6]  }
  0x30   : > { %s3668_s3 = sld [smem:[#allocation21_spill]] }
  0x36   : > { %s2819_s19 = scalar_lea.hbm %s3668_s3, 3072 }
  0x37   : > { %p2820_p10 = scmp.ne.s32.totalorder %s3668_s3, %s2819_s19  ;;  %p2826_p4 = scmp.lt.u32.totalorder %s2819_s19, %s3668_s3 }
  0x39   : > { %p2822_p11 = pnand %p2820_p10, %p3212_p8 }
  0x3b   : > { %p2823_p12 = pneg %p2822_p11 }
  0x3d   : > { %p2828_p13 = pnand %p2826_p4, %p2823_p12 }
  0x3f   : > { %2831 = shalt.err (!%p2828_p13)
}
  0x40   : > { %s2832_s30 = scalar_lea.vmem %s3194_s17, 3072  ;;  %p2840_p7 = scmp.lt.s32.totalorder %s3194_s17, %s3194_s17 }
  0x41   : > { %p2833_p0 = scmp.ne.s32.totalorder %s3194_s17, %s2832_s30  ;;  %p2841_p9 = scmp.lt.s32.totalorder %s2832_s30, %s2832_s30 }
  0x43   : > { %p2835_p2 = pnand %p2833_p0, %p3212_p8  ;;  %p2842_p10 = por %p2841_p9, %p2840_p7 }
  0x45   : > { %p2836_p5 = pneg %p2835_p2 }
  0x47   : > { %p2843_p11 = pnand %p2842_p10, %p2836_p5 }
  0x49   : > { %2846 = shalt.err (!%p2843_p11)
}
  0x4a   : > { %s3072_s10 = smov 192   ;;  %s3073_s12 = smov 12  }
  0x4b   : > { %2569 = dma.hbm_to_vmem [thread:$0]  (!%p3198_p6), %s3668_s3, 3072, %s3194_s17, [#allocation9], %s3072_s10, %s3072_s10, %s3073_s12  }
  0x4c   : > { %s2847_s19 = scalar_lea.hbm %s3648_s9, 4096 }
  0x4d   : > { %p2848_p12 = scmp.ne.s32.totalorder %s3648_s9, %s2847_s19  ;;  %p2854_p0 = scmp.lt.u32.totalorder %s2847_s19, %s3648_s9 }
  0x4f   : > { %p2850_p4 = pnand %p2848_p12, %p3212_p8 }
  0x51   : > { %p2851_p13 = pneg %p2850_p4 }
  0x53   : > { %p2856_p2 = pnand %p2854_p0, %p2851_p13 }
  0x55   : > { %2859 = shalt.err (!%p2856_p2)
}
  0x56   : > { %s2860_s17 = scalar_lea.vmem %s3202_s20, 4096  ;;  %p2868_p10 = scmp.lt.s32.totalorder %s3202_s20, %s3202_s20 }
  0x57   : > { %p2861_p5 = scmp.ne.s32.totalorder %s3202_s20, %s2860_s17  ;;  %p2869_p11 = scmp.lt.s32.totalorder %s2860_s17, %s2860_s17 }
  0x59   : > { %p2863_p7 = pnand %p2861_p5, %p3212_p8  ;;  %p2870_p12 = por %p2869_p11, %p2868_p10 }
  0x5b   : > { %p2864_p9 = pneg %p2863_p7 }
  0x5d   : > { %p2871_p4 = pnand %p2870_p12, %p2864_p9 }
  0x5f   : > { %2874 = shalt.err (!%p2871_p4)
}
  0x60   : > { %s3074_s10 = smov 256   ;;  %s3075_s1 = smov 16  }
  0x61   : > { %2575 = dma.hbm_to_vmem [thread:$0]  (!%p3198_p6), %s3648_s9, 4096, %s3202_s20, [#allocation12], %s3074_s10, %s3074_s10, %s3075_s1  }
  0x62   : > { %s3076_s23 = smov [#allocation7]   ;;  %s3077_s29 = smov [#allocation10]  }
  0x63   : > { %s365_s24 = sshll.u32 %s3076_s23, 4  ;;  %s391_s19 = sshll.u32 %s3077_s29, 4  ;;  %s366_s24 = int_to_ptr.vmem [resolvable:$true] %s365_s24  ;;  %s392_s19 = int_to_ptr.vmem [resolvable:$true] %s391_s19 }
  0x64   : > { %s2875_s30 = scalar_lea.hbm %s3641_s2, 16 }
  0x65   : > { %p2876_p13 = scmp.ne.s32.totalorder %s3641_s2, %s2875_s30  ;;  %p2882_p5 = scmp.lt.u32.totalorder %s2875_s30, %s3641_s2 }
  0x67   : > { %p2878_p0 = pnand %p2876_p13, %p3212_p8 }
  0x69   : > { %p2879_p2 = pneg %p2878_p0 }
  0x6b   : > { %p2884_p7 = pnand %p2882_p5, %p2879_p2 }
  0x6d   : > { %2887 = shalt.err (!%p2884_p7)
}
  0x6e   : > { %s2888_s20 = scalar_lea.vmem %s366_s24, 16  ;;  %s2895_s10 = scalar_lea.vmem %s366_s24, 32 }
  0x6f   : > { %p2889_p9 = scmp.ne.s32.totalorder %s366_s24, %s2888_s20  ;;  %p2896_p12 = scmp.lt.s32.totalorder %s366_s24, %s366_s24 }
  0x70   : > { %p2897_p4 = scmp.lt.s32.totalorder %s2895_s10, %s2888_s20 }
  0x71   : > { %p2891_p10 = pnand %p2889_p9, %p3212_p8 }
  0x72   : > { %p2898_p1 = por %p2897_p4, %p2896_p12 }
  0x73   : > { %p2892_p11 = pneg %p2891_p10 }
  0x75   : > { %p2899_p3 = pnand %p2898_p1, %p2892_p11 }
  0x77   : > { %2902 = shalt.err (!%p2899_p3)
}
  0x78   : > { %2566 = dma.hbm_to_vmem [thread:$0]  (!%p3198_p6), %s3641_s2, 16, %s366_s24, [#allocation6]  }
  0x79   : > { %s2903_s12 = scalar_lea.hbm %s3644_s5, 1024 }
  0x7a   : > { %p2904_p13 = scmp.ne.s32.totalorder %s3644_s5, %s2903_s12  ;;  %p2910_p3 = scmp.lt.u32.totalorder %s2903_s12, %s3644_s5 }
  0x7c   : > { %p2906_p0 = pnand %p2904_p13, %p3212_p8 }
  0x7e   : > { %p2907_p1 = pneg %p2906_p0 }
  0x80   : > { %p2912_p2 = pnand %p2910_p3, %p2907_p1 }
  0x82   : > { %2915 = shalt.err (!%p2912_p2)
}
  0x83   : > { %s2916_s22 = scalar_lea.vmem %s392_s19, 1024  ;;  %p2924_p10 = scmp.lt.s32.totalorder %s392_s19, %s392_s19 }
  0x84   : > { %p2917_p5 = scmp.ne.s32.totalorder %s392_s19, %s2916_s22  ;;  %p2925_p11 = scmp.lt.s32.totalorder %s2916_s22, %s2916_s22 }
  0x86   : > { %p2919_p7 = pnand %p2917_p5, %p3212_p8  ;;  %p2926_p12 = por %p2925_p11, %p2924_p10 }
  0x88   : > { %p2920_p9 = pneg %p2919_p7 }
  0x8a   : > { %p2927_p4 = pnand %p2926_p12, %p2920_p9 }
  0x8c   : > { %2930 = shalt.err (!%p2927_p4)
}
  0x8d   : > { %s3078_s24 = smov 64   ;;  %s3079_s30 = smov 4  }
  0x8e   : > { %2572 = dma.hbm_to_vmem [thread:$0]  (!%p3198_p6), %s3644_s5, 1024, %s392_s19, [#allocation9], %s3078_s24, %s3078_s24, %s3079_s30  }
  0x8f   : > { %s3080_s10 = smov [#allocation13]   ;;  %s2931_s8 = scalar_lea.hbm %s3650_s11, 4096 }
  0x90   : > { %s429_s3 = sshll.u32 %s3080_s10, 4  ;;  %p2932_p13 = scmp.ne.s32.totalorder %s3650_s11, %s2931_s8  ;;  %s430_s3 = int_to_ptr.vmem [resolvable:$true] %s429_s3 }
  0x91   : > { %p2938_p3 = scmp.lt.u32.totalorder %s2931_s8, %s3650_s11 }
  0x92   : > { %p2934_p0 = pnand %p2932_p13, %p3212_p8 }
  0x94   : > { %p2935_p1 = pneg %p2934_p0 }
  0x96   : > { %p2940_p2 = pnand %p2938_p3, %p2935_p1 }
  0x98   : > { %2943 = shalt.err (!%p2940_p2)
}
  0x99   : > { %s2944_s19 = scalar_lea.vmem %s430_s3, 4096  ;;  %p2952_p10 = scmp.lt.s32.totalorder %s430_s3, %s430_s3 }
  0x9a   : > { %p2945_p5 = scmp.ne.s32.totalorder %s430_s3, %s2944_s19  ;;  %p2953_p11 = scmp.lt.s32.totalorder %s2944_s19, %s2944_s19 }
  0x9c   : > { %p2947_p7 = pnand %p2945_p5, %p3212_p8  ;;  %p2954_p12 = por %p2953_p11, %p2952_p10 }
  0x9e   : > { %p2948_p9 = pneg %p2947_p7 }
  0xa0   : > { %p2955_p4 = pnand %p2954_p12, %p2948_p9 }
  0xa2   : > { %2958 = shalt.err (!%p2955_p4)
}
  0xa3   : > { %2578 = dma.hbm_to_vmem [thread:$0]  (!%p3198_p6), %s3650_s11, 4096, %s430_s3, [#allocation12], %s3078_s24, %s3078_s24, %s3079_s30  }
  0xa4   : > { %s2232_s16 = sadd.s32 4294967294, %s3067_s28   ;;  %s3336_s18 = sadd.s32 1, %s3067_s28  }
  0xa5   : > { %s36_s17 = ssub.s32 %s3067_s28, %s3336_s18  ;;  %s39_s20 = sadd.s32 1, %s3063_s27 }
  0xa6   : > { %p37_p8 = scmp.eq.s32.totalorder %s36_s17, 0  ;;  %p46_p13 = scmp.ne.s32.totalorder %s3063_s27, %s3059_s26 }
  0xa7   : > { %p47_p0 = scmp.eq.s32.totalorder %s3067_s28, 0  ;;  %p52_p1 = scmp.ne.s32.totalorder %s3059_s26, %s3055_s25 }
  0xa8   : > { %s3347_s10 = scalar_select %p37_p8, %s3063_s27, %s39_s20  }
  0xa9   : > { %p3349_p3 = por %p47_p0, %p46_p13  ;;  %p3670_p2 = scmp.eq.s32.totalorder %s3180_s14, 0 }
  0xaa   : > { %p328_p5 = scmp.eq.s32.totalorder %s3180_s14, 1  ;;  %p334_p7 = scmp.eq.s32.totalorder %s2232_s16, 1 }
  0xab   : > { %p3355_p6 = por %p3670_p2, %p52_p1  ;;  %p2593_p9 = scmp.lt.s32.totalorder %s3067_s28, 2 }
  0xac   : > { %s446_s30 = sand.u32 1, %s3063_s27   ;;  %p3362_p10 = por %p328_p5, %p46_p13 }
  0xad   : > { %p3366_p11 = por %p334_p7, %p52_p1  ;;  %s2241_s8 = sshll.u32 %s446_s30, 3 }
  0xae   : > { %s3672_s3 = scalar_select %p3362_p10, 1, 0 }
  0xaf   : > { %s3673_s7 = scalar_select %p3366_p11, 1, 0 }
  0xb0   : > { %s2242_s12 = sshll.u32 %s3067_s28, 7  ;;  %s450_s19 = scalar_lea.vmem [#allocation2], %s2241_s8 }
  0xb1   : > { %s3374_s29 = scalar_lea.hbm %s3639_s0, %s2242_s12  ;;  %s457_s21 = sshll.u32 %s450_s19, 4  ;;  %s3376_s21 = int_to_ptr.vmem [resolvable:$true] %s457_s21 }
  0xb2   : > { %p3380_p12 = pnand %p2593_p9, %p3349_p3  ;;  %s447_s16 = scalar_lea.sflag [#allocation3], %s446_s30 }
  0xb3   : > { %s2959_s17 = scalar_lea.hbm %s3374_s29, 128  ;;  %s2964_s12 = scalar_lea.hbm %s3639_s0, 256 }
  0xb4   : > { %p2960_p4 = scmp.ne.s32.totalorder %s3374_s29, %s2959_s17  ;;  %p2961_p8 = pneg %p3380_p12 }
  0xb5   : > { %p2965_p1 = scmp.lt.u32.totalorder %s3374_s29, %s3639_s0  ;;  %p2966_p3 = scmp.lt.u32.totalorder %s2964_s12, %s2959_s17 }
  0xb6   : > { %p2962_p13 = pnand %p2961_p8, %p2960_p4  ;;  %p2968_p5 = scmp.lt.u32.totalorder %s2959_s17, %s3374_s29 }
  0xb7   : > { %p2967_p2 = por %p2966_p3, %p2965_p1 }
  0xb8   : > { %p2963_p0 = pneg %p2962_p13 }
  0xb9   : > { %p2969_p7 = por %p2968_p5, %p2967_p2 }
  0xbb   : > { %p2970_p9 = pnand %p2969_p7, %p2963_p0 }
  0xbd   : > { %2973 = shalt.err (!%p2970_p9)
}
  0xbe   : > { %s2974_s30 = scalar_lea.vmem %s3376_s21, 128  ;;  %s3081_s23 = smov [#allocation2]  }
  0xbf   : > { %p2975_p4 = scmp.ne.s32.totalorder %s3376_s21, %s2974_s30  ;;  %s2979_s19 = sshll.u32 %s3081_s23, 4  ;;  %s2980_s19 = int_to_ptr.vmem [resolvable:$false] %s2979_s19 }
  0xc0   : > { %s2981_s20 = scalar_lea.vmem %s2980_s19, 256  ;;  %p2982_p10 = scmp.lt.s32.totalorder %s3376_s21, %s2980_s19 }
  0xc1   : > { %p2977_p13 = pnand %p2975_p4, %p2961_p8  ;;  %p2983_p1 = scmp.lt.s32.totalorder %s2981_s20, %s2974_s30 }
  0xc3   : > { %p2978_p11 = pneg %p2977_p13  ;;  %p2984_p3 = por %p2983_p1, %p2982_p10 }
  0xc5   : > { %p2985_p2 = pnand %p2984_p3, %p2978_p11 }
  0xc7   : > { %2988 = shalt.err (!%p2985_p2)
}
  0xc8   : > { %2582 = dma.hbm_to_vmem [thread:$0]  (!%p3380_p12), %s3374_s29, 128, %s3376_s21, %s447_s16  }
  0xc9   : > { %p3675_p0 = scmp.ne.s32.totalorder %s3664_s15, 0 }
  0xca   : > { %s3412_s17 = sand.u32 (!%p3675_p0), 1, %s3059_s26  }
  0xcb   : > { %466 = sbr.rel (%p3675_p0) target bundleno = 3160 (0xc58), region = 72  ;;  %s2244_s8 = sshll.u32 (!%p3675_p0), %s3412_s17, 3 }
  0xcc   : > { %s469_s12 = scalar_lea.sflag (!%p3675_p0), [#allocation3], %s3412_s17  ;;  %s472_s1 = scalar_lea.vmem (!%p3675_p0), [#allocation2], %s2244_s8 }
  0xd2   : > { %3034 = dma.done.wait (%p3355_p6), %s469_s12, 128  }
  0xd3   : > { %3036 = vsyncadd (%p3355_p6), %s469_s12, 4294967168  ;;  %p3676_p10 = scmp.eq.s32.totalorder %s3180_s14, 0 }
  0xd5   : > { %3038 = dma.done.wait (%p3676_p10), [#allocation6], 32   ;;  %p3677_p11 = pmov %p3676_p10 }
  0xd6   : > { %p3678_p12 = pmov %p3676_p10 }
  0xd7   : > { %3040 = vsyncadd (%p3677_p11), [#allocation6], 4294967264 }
  0xd8   : > { %3042 = dma.done.wait (%p3678_p12), [#allocation9], 4096   ;;  %p3679_p8 = pmov %p3676_p10 }
  0xda   : > { %3044 = vsyncadd (%p3679_p8), [#allocation9], 4294963200  ;;  %p3680_p5 = pmov %p3679_p8 }
  0xdc   : > { %3046 = dma.done.wait (%p3680_p5), [#allocation12], 8192   ;;  %p3681_p7 = pmov %p3680_p5 }
  0xdd   : > { %v3434_v0 = vld [vmem:[%s472_s1] sm:$0xff]  ;;  %v3082_v3 = vmov 0.0   ;;  %v2655_v5 = vld [vmem:[#allocation8 + $0x1c] ss:$12 sps:$4 sm:$0xff]   ;;  %v3083_v25 = vmov 0   ;;  %vm3084_vm0 = vmmov 0   ;;  %v604_v41 = vlaneseq }
  0xde   : > { %3048 = vsyncadd (%p3681_p7), [#allocation12], 4294959104  ;;  %543 = vadd.xlane.f32.xlu0 %v3434_v0  ;;  %v2651_v1 = vld [vmem:[#allocation8 + $0x4] ss:$12 sps:$4 sm:$0xff]   ;;  %v2653_v2 = vld [vmem:[#allocation8] ss:$12 sps:$4 sm:$0xff]   ;;  %2444 = vmatprep.subr.bf16.mxu1 %v3082_v3 }
  0xdf   : > { %v2654_v4 = vld [vmem:[#allocation8 + $0x8] ss:$12 sps:$4 sm:$0xff]   ;;  %v2657_v6 = vld [vmem:[#allocation8 + $0x18] ss:$12 sps:$4 sm:$0xff]   ;;  %747 = vmatprep.subr.bf16.mxu0 %v2651_v1  ;;  %v2658_v7 = vld [vmem:[#allocation8 + $0x20] ss:$12 sps:$4 sm:$0xff]   ;;  %779 = vmatprep.mubr.bf16.mxu0 %v3083_v25 }
  0xe0   : > { %v2659_v8 = vld [vmem:[#allocation8 + $0x34] ss:$12 sps:$4 sm:$0xff]   ;;  %748 = vmatpush1.bf16.msra.mxu0 %v2653_v2  ;;  %2445 = vmatpush3.bf16.msra.mxu1 %v2654_v4  ;;  %v2661_v13 = vld [vmem:[#allocation8 + $0x30] ss:$12 sps:$4 sm:$0xff]   ;;  %v2662_v14 = vld [vmem:[#allocation8 + $0x38] ss:$12 sps:$4 sm:$0xff]  }
  0xe1   : > { %749 = vmatprep.subr.bf16.mxu0 %v2655_v5  ;;  %2446 = vmatprep.subr.bf16.mxu1 %v3082_v3  ;;  %v2663_v15 = vld [vmem:[#allocation8 + $0x4c] ss:$12 sps:$4 sm:$0xff]   ;;  %v2665_v16 = vld [vmem:[#allocation8 + $0x48] ss:$12 sps:$4 sm:$0xff]   ;;  %v2666_v17 = vld [vmem:[#allocation8 + $0x50] ss:$12 sps:$4 sm:$0xff]  }
  0xe2   : > { %v2667_v18 = vld [vmem:[#allocation8 + $0x64] ss:$12 sps:$4 sm:$0xff]   ;;  %v2669_v19 = vld [vmem:[#allocation8 + $0x60] ss:$12 sps:$4 sm:$0xff]   ;;  %v2670_v20 = vld [vmem:[#allocation8 + $0x68] ss:$12 sps:$4 sm:$0xff]   ;;  %2460 = vmatprep.mubr.msk.bf16.mxu1 %vm3084_vm0, %v3082_v3 }
  0xe3   : > { %v2671_v21 = vld [vmem:[#allocation8 + $0x7c] ss:$12 sps:$4 sm:$0xff]   ;;  %v2673_v22 = vld [vmem:[#allocation8 + $0x78] ss:$12 sps:$4 sm:$0xff]   ;;  %v2674_v23 = vld [vmem:[#allocation8 + $0x80] ss:$12 sps:$4 sm:$0xff]  }
  0xe4   : > { %750 = vmatpush1.bf16.msra.mxu0 %v2657_v6  ;;  %2447 = vmatpush3.bf16.msra.mxu1 %v2658_v7  ;;  %v2675_v24 = vld [vmem:[#allocation8 + $0x94] ss:$12 sps:$4 sm:$0xff]   ;;  %v2677_v26 = vld [vmem:[#allocation8 + $0x90] ss:$12 sps:$4 sm:$0xff]   ;;  %v2678_v27 = vld [vmem:[#allocation8 + $0x98] ss:$12 sps:$4 sm:$0xff]  }
  0xe5   : > { %751 = vmatprep.subr.bf16.mxu0 %v2659_v8  ;;  %2448 = vmatprep.subr.bf16.mxu1 %v3082_v3  ;;  %v2679_v28 = vld [vmem:[#allocation8 + $0xac] ss:$12 sps:$4 sm:$0xff]   ;;  %v2681_v29 = vld [vmem:[#allocation8 + $0xa8] ss:$12 sps:$4 sm:$0xff]   ;;  %v2682_v30 = vld [vmem:[#allocation8 + $0xb0] ss:$12 sps:$4 sm:$0xff]  }
  0xe6   : > { %v2252_v35 = vld [vmem:[#allocation5] ss:$0 sm:$0xff]  ;;  %v2253_v37 = vld [vmem:[#allocation7] ss:$0 sm:$0xff]  ;;  %v3455_v42 = vshrl.u32 %v604_v41, 7  ;;  %vm836_vm1 = vcmask 261120  }
  0xe7   : > { %v602_v44 = vld [vmem:[%s3643_s4] sm:$0x7]  ;;  %s3085_s29 = smov 96   ;;  %s3086_s21 = smov 32   ;;  %vm901_vm2 = vcmask 1043456   ;;  %v3481_v4 = vand.u32 127, %v604_v41 }
  0xe8   : > { %752 = vmatpush1.bf16.msra.mxu0 %v2661_v13  ;;  %2449 = vmatpush3.bf16.msra.mxu1 %v2662_v14  ;;  %v610_v43 = vsub.s32 1, %v3455_v42  ;;  %v614_v45 = vsub.s32 2, %v3455_v42  ;;  %v606_v47 = vsub.s32 0, %v3455_v42  ;;  %vm885_vm4 = vcmask 64512   ;;  %s3087_s22 = smov 64   ;;  %s3682_s19 = sld [smem:[#allocation22_spill]] }
  0xe9   : > { %2450 = vmatprep.subr.bf16.mxu1 %v3082_v3  ;;  %753 = vmatprep.subr.bf16.mxu0 %v2663_v15  ;;  %vm832_vm3 = vcmp.le.s32.totalorder %v3481_v4, %v3455_v42  ;;  %vm1297_vm5 = vcmask 523264   ;;  %vm1299_vm6 = vcmask 785408   ;;  %s3683_s1 = sld [smem:[#allocation23_spill]]  ;;  %s3685_s16 = sld [smem:[#allocation25_spill]] }
  0xea   : > { %v611_v46 = vrot.slane %v602_v44, %v610_v43  ;;  %v615_v52 = vrot.slane %v602_v44, %v614_v45  ;;  %v607_v58 = vrot.slane %v602_v44, %v606_v47  ;;  %s2363_s13 = sshll.u32 %s3180_s14, 7  ;;  %s538_s30 = scalar_lea.vmem [#allocation14], %s2244_s8 }
  0xeb   : > { %s2105_s23 = sshll.u32 %s538_s30, 4  ;;  %s3686_s12 = sld [smem:[#allocation26_spill]]  ;;  %s3597_s23 = int_to_ptr.vmem [resolvable:$true] %s2105_s23 }
  0xec   : > { %754 = vmatpush1.bf16.msra.mxu0 %v2665_v16  ;;  %2451 = vmatpush3.bf16.msra.mxu1 %v2666_v17  ;;  %s2092_s15 = scalar_lea.sflag [#allocation4], %s3412_s17  ;;  %s2989_s24 = scalar_lea.vmem %s3597_s23, 128 }
  0xed   : > { %2452 = vmatprep.subr.bf16.mxu1 %v3082_v3  ;;  %755 = vmatprep.subr.bf16.mxu0 %v2667_v18  ;;  %p2990_p6 = scmp.ne.s32.totalorder %s3597_s23, %s2989_s24  ;;  %p3687_p9 = scmp.ne.s32.totalorder %s3672_s3, 0 }
  0xee   : > { %s3088_s14 = smov [#allocation14]  }
  0xef   : > { %p2991_p4 = pnand %p2990_p6, %p3687_p9  ;;  %s2993_s8 = sshll.u32 %s3088_s14, 4  ;;  %s2994_s8 = int_to_ptr.vmem [resolvable:$false] %s2993_s8 }
  0xf0   : > { %756 = vmatpush1.bf16.msra.mxu0 %v2669_v19  ;;  %2453 = vmatpush3.bf16.msra.mxu1 %v2670_v20  ;;  %p2996_p1 = scmp.lt.s32.totalorder %s3597_s23, %s2994_s8 }
  0xf1   : > { %757 = vmatprep.subr.bf16.mxu0 %v2671_v21  ;;  %2454 = vmatprep.subr.bf16.mxu1 %v3082_v3  ;;  %p2992_p13 = pneg %p2991_p4 }
  0xf4   : > { %758 = vmatpush1.bf16.msra.mxu0 %v2673_v22  ;;  %2455 = vmatpush3.bf16.msra.mxu1 %v2674_v23 }
  0xf5   : > { %759 = vmatprep.subr.bf16.mxu0 %v2675_v24  ;;  %2456 = vmatprep.subr.bf16.mxu1 %v3082_v3 }
  0xf8   : > { %760 = vmatpush1.bf16.msra.mxu0 %v2677_v26  ;;  %2457 = vmatpush3.bf16.msra.mxu1 %v2678_v27 }
  0xf9   : > { %761 = vmatprep.subr.bf16.mxu0 %v2679_v28  ;;  %2458 = vmatprep.subr.bf16.mxu1 %v3082_v3 }
  0xfc   : > { %762 = vmatpush1.bf16.msra.mxu0 %v2681_v29  ;;  %2459 = vmatpush3.bf16.msra.mxu1 %v2682_v30 }
  0xfd   : > { %2464 = vmatprep.subr.bf16.mxu1 %v3082_v3  ;;  %2488 = vmatprep.subr.bf16.mxu0 %v3082_v3 }
 0x16b   : > { %v544_v9 = vpop.xlane.xlu0 %543 }
 0x16c   : > { %v546_v10 = vmul.f32 0.0078125, %v544_v9 }
 0x16e   : > { %v547_v11 = vsub.f32 %v3434_v0, %v546_v10 }
 0x170   : > { %v548_v12 = vmul.f32 %v547_v11, %v547_v11 }
 0x172   : > { %549 = vadd.xlane.f32.xlu0 %v548_v12 }
 0x1ff   : > { %v550_v31 = vpop.xlane.xlu0 %549 }
 0x200   : > { %v551_v32 = vmul.f32 0.0078125, %v550_v31 }
 0x202   : > { %v552_v33 = vadd.f32 1e-05, %v551_v32 }
 0x204   : > { %2771 = vrsqrt.f32 %v552_v33 }
 0x20e   : > { %v2772_v34 = vpop.eup %2771 }
 0x20f   : > { %v554_v36 = vmul.f32 %v2772_v34, %v547_v11 }
 0x211   : > { %v561_v38 = vmul.f32 %v2252_v35, %v554_v36 }
 0x213   : > { %v568_v39 = vadd.f32 %v2253_v37, %v561_v38 }
 0x215   : > { %v569_v40 = vpack.c.bf16 %v568_v39, %v568_v39 }
 0x217   : > { %780 = vmatmul.mubr.bf16.vlgmr.msra.gmra.mrb[0].mxu0 %v569_v40  ;;  %2461 = vmatmul.mubr.bf16.vlgmr.msra.gmra.mrb[0].mxu1 %v569_v40 }
 0x218   : > { %2466 = vmatprep.mubr.msk.bf16.mxu1 %vm3084_vm0, %v3082_v3  ;;  %2490 = vmatprep.mubr.msk.bf16.mxu0 %vm3084_vm0, %v3082_v3 }
 0x2ea   : > { %v781_v48 = vpop.f32.mrb[0].mxu0  ;;  %v822_v49 = vpop.f32.mrb[0].mxu1 }
 0x2eb   : > { %v783_v50 = vpop.f32.mrb[1].mxu0  ;;  %v2462_v51 = vpop.f32.mrb[1].mxu1  ;;  %v823_v60 = vadd.f32 %v822_v49, %v615_v52  ;;  %v782_v62 = vadd.f32 %v781_v48, %v607_v58 }
 0x2ec   : > { %v784_v53 = vadd.f32 %v783_v50, %v611_v46  ;;  %v785_v54 = vpop.f32.mrb[2].mxu0  ;;  %v825_v55 = vpop.f32.mrb[2].mxu1 }
 0x2ed   : > { %v786_v56 = vpop.f32.mrb[3].mxu0  ;;  %v2463_v57 = vpop.f32.mrb[3].mxu1  ;;  %v3472_v63 = vpack.c.bf16 %v823_v60, %v823_v60  ;;  %v833_v1 = vpack.c.bf16 %v782_v62, %v782_v62 }
 0x2ee   : > { %v834_v59 = vpack.c.bf16 %v784_v53, %v784_v53 }
 0x2ef   : > { %v903_v2 = vsel %vm901_vm2, %v3472_v63, 0 }
 0x2f0   : > { %949 = vrot.lane.b32.xlu0 %v834_v59, %s3085_s29  ;;  %v841_v61 = vsel %vm836_vm1, %v834_v59, 0 }
 0x2f1   : > { %2465 = vmatpush3.bf16.xpose.msra.mxu1 %v841_v61 }
 0x2f2   : > { %2470 = vmatprep.subr.bf16.mxu1 %v3082_v3 }
 0x2f4   : > { %1174 = vrot.lane.b32.xlu0 %v834_v59, %s3086_s21 }
 0x2f8   : > { %2467 = vmatmul.mubr.msk.bf16.vlgmr.msra.gmra.mrb[4].mxu1 %vm836_vm1, %v833_v1 }
 0x2f9   : > { %2471 = vmatpush3.bf16.msra.mxu1 %v903_v2  ;;  %2472 = vmatprep.mubr.msk.bf16.mxu1 %vm3084_vm0, %v3082_v3 }
 0x2fa   : > { %2476 = vmatprep.subr.bf16.mxu1 %v3082_v3 }
 0x362   : > { %v950_v19 = vpop.permute.xlu0 %949 }
 0x363   : > { %v955_v27 = vsel %vm836_vm1, %v950_v19, 0 }
 0x366   : > { %v1175_v24 = vpop.permute.xlu0 %1174 }
 0x367   : > { %v1180_v29 = vsel %vm836_vm1, %v1175_v24, 0 }
 0x3cb   : > { %v877_v5 = vpop.f32.mrb[4].mxu1 }
 0x3cc   : > { %v883_v6 = vmul.f32 0.17677669, %v877_v5  ;;  %v2468_v7 = vpop.f32.mrb[5].mxu1 }
 0x3cd   : > { %v880_v8 = vpop.f32.mrb[6].mxu1 }
 0x3ce   : > { %v2469_v9 = vpop.f32.mrb[7].mxu1  ;;  %v884_v10 = vsel %vm832_vm3, %v883_v6, -inf }
 0x3cf   : > { %v886_v11 = vsel %vm885_vm4, %v884_v10, -inf }
 0x3d0   : > { %887 = vmax.xlane.f32.xlu1 %v886_v11 }
 0x45d   : > { %v888_v12 = vpop.xlane.xlu1 %887 }
 0x45e   : > { %v889_v13 = vsub.f32 %v884_v10, %v888_v12 }
 0x460   : > { %v890_v14 = vmul.f32 1.442695, %v889_v13 }
 0x462   : > { %2773 = vpow2.f32 %v890_v14 }
 0x46c   : > { %v2774_v15 = vpop.eup %2773 }
 0x46d   : > { %v892_v16 = vsel %vm885_vm4, %v2774_v15, 0.0 }
 0x46e   : > { %893 = vadd.xlane.f32.xlu1 %v892_v16 }
 0x47f   : > { %946 = vrot.lane.b32.xlu1 %v833_v1, %s3085_s29 }
 0x483   : > { %1062 = vrot.lane.b32.xlu1 %v834_v59, %s3087_s22 }
 0x487   : > { %1060 = vrot.lane.b32.xlu1 %v833_v1, %s3087_s22 }
 0x48b   : > { %1172 = vrot.lane.b32.xlu1 %v833_v1, %s3086_s21 }
 0x4fb   : > { %v894_v17 = vpop.xlane.xlu1 %893 }
 0x4fc   : > { %2775 = vrcp.f32 %v894_v17 }
 0x4ff   : > { %v947_v18 = vpop.permute.xlu1 %946 }
 0x503   : > { %v1063_v20 = vpop.permute.xlu1 %1062 }
 0x504   : > { %v1068_v21 = vsel %vm836_vm1, %v1063_v20, 0 }
 0x505   : > { %2489 = vmatpush3.bf16.xpose.msra.mxu0 %v1068_v21 }
 0x506   : > { %v2776_v22 = vpop.eup %2775  ;;  %2500 = vmatprep.subr.bf16.mxu0 %v3082_v3 }
 0x507   : > { %v896_v23 = vmul.f32 %v2776_v22, %v2774_v15  ;;  %v1061_v28 = vpop.permute.xlu1 %1060 }
 0x509   : > { %v897_v26 = vpack.c.bf16 %v896_v23, %v896_v23 }
 0x50b   : > { %2473 = vmatmul.mubr.msk.bf16.vlgmr.msra.gmra.mrb[8].mxu1 %vm885_vm4, %v897_v26  ;;  %v1173_v30 = vpop.permute.xlu1 %1172 }
 0x50c   : > { %2477 = vmatpush3.bf16.xpose.msra.mxu1 %v955_v27  ;;  %2491 = vmatmul.mubr.msk.bf16.vlgmr.msra.gmra.mrb[4].mxu0 %vm836_vm1, %v1061_v28 }
 0x50d   : > { %2501 = vmatpush3.bf16.xpose.msra.mxu0 %v1180_v29  ;;  %2478 = vmatprep.mubr.msk.bf16.mxu1 %vm3084_vm0, %v3082_v3 }
 0x50e   : > { %2502 = vmatprep.mubr.msk.bf16.mxu0 %vm3084_vm0, %v3082_v3  ;;  %2482 = vmatprep.subr.bf16.mxu1 %v3082_v3 }
 0x50f   : > { %2512 = vmatprep.subr.bf16.mxu0 %v3082_v3 }
 0x513   : > { %2479 = vmatmul.mubr.msk.bf16.vlgmr.msra.gmra.mrb[12].mxu1 %vm836_vm1, %v947_v18 }
 0x514   : > { %2503 = vmatmul.mubr.msk.bf16.vlgmr.msra.gmra.mrb[8].mxu0 %vm836_vm1, %v1173_v30  ;;  %2484 = vmatprep.mubr.msk.bf16.mxu1 %vm3084_vm0, %v3082_v3 }
 0x515   : > { %2528 = vmatprep.mubr.msk.bf16.mxu0 %vm3084_vm0, %v3082_v3 }
 0x5de   : > { %v3512_v31 = vpop.f32.mrb[8].mxu1 }
 0x5df   : > { %v2474_v32 = vpop.f32.mrb[9].mxu1  ;;  %v1104_v33 = vpop.f32.mrb[4].mxu0 }
 0x5e0   : > { %v1110_v34 = vmul.f32 0.17677669, %v1104_v33  ;;  %v942_v35 = vpop.f32.mrb[10].mxu1  ;;  %v2492_v36 = vpop.f32.mrb[5].mxu0  ;;  %v2683_v33 = vld [vmem:[#allocation10] sm:$0xff]  }
 0x5e1   : > { %v2475_v37 = vpop.f32.mrb[11].mxu1  ;;  %v1107_v38 = vpop.f32.mrb[6].mxu0  ;;  %2513 = vmatpush3.bf16.msra.mxu0 %v2683_v33  ;;  %v2685_v35 = vld [vmem:[#allocation10 + $0x10] sm:$0xff]   ;;  %v2686_v36 = vld [vmem:[#allocation10 + $0x18] sm:$0xff]  }
 0x5e2   : > { %v2493_v39 = vpop.f32.mrb[7].mxu0  ;;  %v1111_v40 = vsel %vm832_vm3, %v1110_v34, -inf  ;;  %v2684_v34 = vld [vmem:[#allocation10 + $0x8] sm:$0xff]   ;;  %2514 = vmatprep.subr.bf16.mxu0 %v3082_v3  ;;  %v2687_v37 = vld [vmem:[#allocation10 + $0x20] sm:$0xff]  }
 0x5e3   : > { %v1112_v41 = vsel %vm885_vm4, %v1111_v40, -inf  ;;  %v2688_v38 = vld [vmem:[#allocation10 + $0x28] sm:$0xff]   ;;  %v2689_v39 = vld [vmem:[#allocation10 + $0x30] sm:$0xff]  }
 0x5e4   : > { %1113 = vmax.xlane.f32.xlu1 %v1112_v41  ;;  %v2721_v33 = vld [vmem:[#allocation11 + $0xa0] ss:$16 sps:$4 sm:$0xff]  }
 0x5e5   : > { %2515 = vmatpush3.bf16.msra.mxu0 %v2684_v34  ;;  %v2724_v34 = vld [vmem:[#allocation11 + $0xa8] ss:$16 sps:$4 sm:$0xff]  }
 0x5e6   : > { %v991_v44 = vpop.f32.mrb[12].mxu1  ;;  %2516 = vmatprep.subr.bf16.mxu0 %v3082_v3 }
 0x5e7   : > { %v997_v46 = vmul.f32 0.17677669, %v991_v44  ;;  %v2480_v48 = vpop.f32.mrb[13].mxu1  ;;  %v1216_v49 = vpop.f32.mrb[8].mxu0 }
 0x5e8   : > { %v1222_v50 = vmul.f32 0.17677669, %v1216_v49  ;;  %v994_v51 = vpop.f32.mrb[14].mxu1  ;;  %v2504_v52 = vpop.f32.mrb[9].mxu0  ;;  %v2690_v48 = vld [vmem:[#allocation10 + $0x38] sm:$0xff]  }
 0x5e9   : > { %v2481_v53 = vpop.f32.mrb[15].mxu1  ;;  %v1219_v54 = vpop.f32.mrb[10].mxu0  ;;  %v998_v55 = vsel %vm832_vm3, %v997_v46, -inf  ;;  %2517 = vmatpush3.bf16.msra.mxu0 %v2685_v35  ;;  %v2729_v35 = vld [vmem:[#allocation11 + $0xc4] ss:$16 sps:$4 sm:$0xff]  }
 0x5ea   : > { %v2505_v56 = vpop.f32.mrb[11].mxu0  ;;  %v999_v57 = vsel %vm885_vm4, %v998_v55, -inf  ;;  %v1223_v58 = vsel %vm832_vm3, %v1222_v50, -inf  ;;  %2518 = vmatprep.subr.bf16.mxu0 %v3082_v3 }
 0x5eb   : > { %1000 = vmax.xlane.f32.xlu0 %v999_v57  ;;  %v1224_v59 = vsel %vm885_vm4, %v1223_v58, -inf }
 0x5ed   : > { %2519 = vmatpush3.bf16.msra.mxu0 %v2686_v36  ;;  %v2732_v36 = vld [vmem:[#allocation11 + $0xcc] ss:$16 sps:$4 sm:$0xff]  }
 0x5ee   : > { %2520 = vmatprep.subr.bf16.mxu0 %v3082_v3 }
 0x5ef   : > { %1225 = vmax.xlane.f32.xlu0 %v1224_v59 }
 0x5f1   : > { %2521 = vmatpush3.bf16.msra.mxu0 %v2687_v37  ;;  %v2727_v37 = vld [vmem:[#allocation11 + $0xc0] ss:$16 sps:$4 sm:$0xff]  }
 0x5f2   : > { %2522 = vmatprep.subr.bf16.mxu0 %v3082_v3 }
 0x5f5   : > { %2523 = vmatpush3.bf16.msra.mxu0 %v2688_v38  ;;  %v2730_v38 = vld [vmem:[#allocation11 + $0xc8] ss:$16 sps:$4 sm:$0xff]  }
 0x5f6   : > { %2524 = vmatprep.subr.bf16.mxu0 %v3082_v3 }
 0x5f9   : > { %2525 = vmatpush3.bf16.msra.mxu0 %v2689_v39  ;;  %v2735_v39 = vld [vmem:[#allocation11 + $0xe4] ss:$16 sps:$4 sm:$0xff]  }
 0x5fa   : > { %2526 = vmatprep.subr.bf16.mxu0 %v3082_v3 }
 0x5fd   : > { %2527 = vmatpush3.bf16.msra.mxu0 %v2690_v48  ;;  %v2740_v48 = vld [vmem:[#allocation13 + $0xc0] sm:$0xff]  }
 0x671   : > { %v1114_v60 = vpop.xlane.xlu1 %1113 }
 0x672   : > { %v1115_v61 = vsub.f32 %v1111_v40, %v1114_v60 }
 0x674   : > { %v1116_v62 = vmul.f32 1.442695, %v1115_v61 }
 0x676   : > { %2777 = vpow2.f32 %v1116_v62 }
 0x678   : > { %v1001_v1 = vpop.xlane.xlu0 %1000 }
 0x679   : > { %v1002_v2 = vsub.f32 %v998_v55, %v1001_v1  ;;  %v2286_v1 = vld [vmem:[%s3645_s6] ss:$0 sm:$0xff] }
 0x67b   : > { %v1003_v5 = vmul.f32 1.442695, %v1002_v2 }
 0x67c   : > { %v1226_v6 = vpop.xlane.xlu0 %1225 }
 0x67d   : > { %2779 = vpow2.f32 %v1003_v5  ;;  %v1227_v7 = vsub.f32 %v1223_v58, %v1226_v6 }
 0x67f   : > { %v1228_v8 = vmul.f32 1.442695, %v1227_v7 }
 0x680   : > { %v2778_v9 = vpop.eup %2777 }
 0x681   : > { %2781 = vpow2.f32 %v1228_v8  ;;  %v1118_v10 = vsel %vm885_vm4, %v2778_v9, 0.0 }
 0x682   : > { %1119 = vadd.xlane.f32.xlu0 %v1118_v10  ;;  %v2693_v10 = vld [vmem:[#allocation11 + $0x4] ss:$16 sps:$4 sm:$0xff]  }
 0x687   : > { %v2780_v4 = vpop.eup %2779 }
 0x688   : > { %v1005_v11 = vsel %vm885_vm4, %v2780_v4, 0.0 }
 0x689   : > { %1006 = vadd.xlane.f32.xlu0 %v1005_v11  ;;  %v2696_v11 = vld [vmem:[#allocation11 + $0xc] ss:$16 sps:$4 sm:$0xff]  }
 0x68a   : > { %1697 = vmatprep.subr.bf16.mxu0 %v2696_v11  ;;  %v2755_v11 = vld [vmem:[#allocation13 + $0x60] sm:$0xff]  }
 0x68b   : > { %v2782_v12 = vpop.eup %2781 }
 0x68c   : > { %v1230_v13 = vsel %vm885_vm4, %v2782_v12, 0.0 }
 0x68d   : > { %1231 = vadd.xlane.f32.xlu1 %v1230_v13  ;;  %v2697_v13 = vld [vmem:[#allocation11 + $0x20] ss:$16 sps:$4 sm:$0xff]  }
 0x69e   : > { %1124 = vrot.lane.b32.xlu1 %v3472_v63, %s3087_s22 }
 0x69f   : > { %1012 = vrot.lane.b32.xlu0 %v3472_v63, %s3085_s29 }
 0x6a2   : > { %1236 = vrot.lane.b32.xlu1 %v3472_v63, %s3086_s21 }
 0x70f   : > { %v1120_v14 = vpop.xlane.xlu0 %1119 }
 0x716   : > { %v1007_v15 = vpop.xlane.xlu0 %1006 }
 0x717   : > { %2783 = vrcp.f32 %v1007_v15  ;;  %v2705_v15 = vld [vmem:[#allocation11 + $0x44] ss:$16 sps:$4 sm:$0xff]  }
 0x718   : > { %2785 = vrcp.f32 %v1120_v14  ;;  %v2700_v14 = vld [vmem:[#allocation11 + $0x28] ss:$16 sps:$4 sm:$0xff]  }
 0x71a   : > { %v1013_v16 = vpop.permute.xlu0 %1012  ;;  %v1232_v18 = vpop.xlane.xlu1 %1231 }
 0x71b   : > { %v1018_v17 = vsel %vm901_vm2, %v1013_v16, 0  ;;  %2787 = vrcp.f32 %v1232_v18  ;;  %v2703_v16 = vld [vmem:[#allocation11 + $0x40] ss:$16 sps:$4 sm:$0xff]  }
 0x71c   : > { %2483 = vmatpush3.bf16.msra.mxu1 %v1018_v17  ;;  %v2706_v17 = vld [vmem:[#allocation11 + $0x48] ss:$16 sps:$4 sm:$0xff]  }
 0x71d   : > { %2494 = vmatprep.subr.bf16.mxu1 %v3082_v3 }
 0x71e   : > { %v1125_v21 = vpop.permute.xlu1 %1124 }
 0x71f   : > { %v1130_v24 = vsel %vm901_vm2, %v1125_v21, 0 }
 0x721   : > { %v2784_v19 = vpop.eup %2783 }
 0x722   : > { %v1009_v20 = vmul.f32 %v2784_v19, %v2780_v4  ;;  %v2786_v23 = vpop.eup %2785  ;;  %v1237_v26 = vpop.permute.xlu1 %1236  ;;  %v2694_v4 = vld [vmem:[#allocation11 + $0x8] ss:$16 sps:$4 sm:$0xff]  }
 0x723   : > { %v1122_v63 = vmul.f32 %v2786_v23, %v2778_v9  ;;  %v1242_v29 = vsel %vm901_vm2, %v1237_v26, 0  ;;  %v2714_v23 = vld [vmem:[#allocation11 + $0x6c] ss:$16 sps:$4 sm:$0xff]   ;;  %v2717_v26 = vld [vmem:[#allocation11 + $0x84] ss:$16 sps:$4 sm:$0xff]  }
 0x724   : > { %v1010_v22 = vpack.c.bf16 %v1009_v20, %v1009_v20 }
 0x725   : > { %v1123_v27 = vpack.c.bf16 %v1122_v63, %v1122_v63  ;;  %v2788_v28 = vpop.eup %2787  ;;  %v2712_v63 = vld [vmem:[#allocation11 + $0x68] ss:$16 sps:$4 sm:$0xff]  }
 0x726   : > { %2485 = vmatmul.mubr.msk.bf16.vlgmr.msra.gmra.mrb[16].mxu1 %vm885_vm4, %v1010_v22  ;;  %v1234_v30 = vmul.f32 %v2788_v28, %v2782_v12  ;;  %v2699_v12 = vld [vmem:[#allocation11 + $0x24] ss:$16 sps:$4 sm:$0xff]   ;;  %v2715_v28 = vld [vmem:[#allocation11 + $0x80] ss:$16 sps:$4 sm:$0xff]  }
 0x727   : > { %2495 = vmatpush3.bf16.msra.mxu1 %v1130_v24  ;;  %2496 = vmatprep.mubr.msk.bf16.mxu1 %vm3084_vm0, %v3082_v3  ;;  %v2711_v22 = vld [vmem:[#allocation11 + $0x64] ss:$16 sps:$4 sm:$0xff]   ;;  %v2709_v24 = vld [vmem:[#allocation11 + $0x60] ss:$16 sps:$4 sm:$0xff]  }
 0x728   : > { %2506 = vmatprep.subr.bf16.mxu1 %v3082_v3  ;;  %v1235_v32 = vpack.c.bf16 %v1234_v30, %v1234_v30  ;;  %v2723_v30 = vld [vmem:[#allocation11 + $0xa4] ss:$16 sps:$4 sm:$0xff]  }
 0x72e   : > { %2497 = vmatmul.mubr.msk.bf16.vlgmr.msra.gmra.mrb[20].mxu1 %vm885_vm4, %v1123_v27  ;;  %v2720_v27 = vld [vmem:[#allocation11 + $0x8c] ss:$16 sps:$4 sm:$0xff]  }
 0x72f   : > { %2507 = vmatpush3.bf16.msra.mxu1 %v1242_v29  ;;  %2508 = vmatprep.mubr.msk.bf16.mxu1 %vm3084_vm0, %v3082_v3  ;;  %v2718_v29 = vld [vmem:[#allocation11 + $0x88] ss:$16 sps:$4 sm:$0xff]  }
 0x730   : > { %1656 = vmatprep.subr.bf16.mxu1 %v2693_v10  ;;  %v2753_v10 = vld [vmem:[#allocation13 + $0x18] sm:$0xff]  }
 0x736   : > { %2509 = vmatmul.mubr.msk.bf16.vlgmr.msra.gmra.mrb[24].mxu1 %vm885_vm4, %v1235_v32  ;;  %v2726_v32 = vld [vmem:[#allocation11 + $0xac] ss:$16 sps:$4 sm:$0xff]  }
 0x737   : > { %1688 = vmatprep.mubr.bf16.mxu1 %v3083_v25 }
 0x7f9   : > { %v1054_v40 = vpop.f32.mrb[16].mxu1 }
 0x7fa   : > { %1285 = vrot.lane.b32.xlu1 %v1054_v40, %s3086_s21  ;;  %v2486_v41 = vpop.f32.mrb[17].mxu1  ;;  %v2738_v40 = vld [vmem:[#allocation11 + $0xec] ss:$16 sps:$4 sm:$0xff]  }
 0x7fb   : > { %v1057_v44 = vpop.f32.mrb[18].mxu1  ;;  %v2733_v41 = vld [vmem:[#allocation11 + $0xe0] ss:$16 sps:$4 sm:$0xff]  }
 0x7fc   : > { %v2487_v46 = vpop.f32.mrb[19].mxu1  ;;  %v2736_v44 = vld [vmem:[#allocation11 + $0xe8] ss:$16 sps:$4 sm:$0xff]  }
 0x7fd   : > { %v2739_v46 = vld [vmem:[#allocation13 + $0x40] sm:$0xff]  }
 0x801   : > { %v1166_v49 = vpop.f32.mrb[20].mxu1 }
 0x802   : > { %1289 = vrot.lane.b32.xlu0 %v1166_v49, %s3087_s22  ;;  %v2498_v50 = vpop.f32.mrb[21].mxu1 }
 0x803   : > { %v1169_v51 = vpop.f32.mrb[22].mxu1 }
 0x804   : > { %v2499_v52 = vpop.f32.mrb[23].mxu1 }
 0x809   : > { %v1278_v53 = vpop.f32.mrb[24].mxu1 }
 0x80a   : > { %1293 = vrot.lane.b32.xlu1 %v1278_v53, %s3085_s29  ;;  %v2510_v54 = vpop.f32.mrb[25].mxu1  ;;  %v2295_v53 = vld [vmem:[%s3682_s19] ss:$0 sm:$0xff]  ;;  %s3684_s29 = sld [smem:[#allocation24_spill]] }
 0x80b   : > { %v1281_v55 = vpop.f32.mrb[26].mxu1 }
 0x80c   : > { %v2511_v56 = vpop.f32.mrb[27].mxu1  ;;  %v2296_v55 = vld [vmem:[%s3683_s1] ss:$0 sm:$0xff]  ;;  %s3595_s1 = scalar_lea.hbm %s3686_s12, %s2363_s13 }
 0x86c   : > { %v1286_v57 = vpop.permute.xlu1 %1285 }
 0x86d   : > { %v1296_v3 = vsel %vm836_vm1, %v3512_v31, %v1286_v57  ;;  %v2691_v31 = vld [vmem:[#allocation11] ss:$16 sps:$4 sm:$0xff]  }
 0x86e   : > { %1657 = vmatpush1.bf16.msra.mxu1 %v2691_v31  ;;  %v2752_v31 = vld [vmem:[#allocation13 + $0xd8] sm:$0xff]  }
 0x86f   : > { %1658 = vmatprep.subr.bf16.mxu1 %v2699_v12  ;;  %v2756_v12 = vld [vmem:[#allocation13 + $0xe0] sm:$0xff]  }
 0x872   : > { %1659 = vmatpush1.bf16.msra.mxu1 %v2697_v13  ;;  %v2758_v13 = vld [vmem:[#allocation13 + $0xa0] sm:$0xff]  }
 0x873   : > { %1660 = vmatprep.subr.bf16.mxu1 %v2705_v15  ;;  %v2760_v15 = vld [vmem:[#allocation13 + $0xe8] sm:$0xff]  }
 0x874   : > { %v1290_v58 = vpop.permute.xlu0 %1289 }
 0x875   : > { %v1298_v59 = vsel %vm1297_vm5, %v1296_v3, %v1290_v58  ;;  %v2741_v58 = vld [vmem:[#allocation13] sm:$0xff]  }
 0x876   : > { %1661 = vmatpush1.bf16.msra.mxu1 %v2703_v16  ;;  %v2742_v3 = vld [vmem:[#allocation13 + $0x80] sm:$0xff]   ;;  %v2762_v16 = vld [vmem:[#allocation13 + $0xa8] sm:$0xff]  }
 0x877   : > { %1662 = vmatprep.subr.bf16.mxu1 %v2711_v22  ;;  %v2768_v22 = vld [vmem:[#allocation13 + $0xf8] sm:$0xff]  }
 0x87a   : > { %1663 = vmatpush1.bf16.msra.mxu1 %v2709_v24  ;;  %v2770_v24 = vld [vmem:[#allocation13 + $0xb8] sm:$0xff]  }
 0x87b   : > { %1664 = vmatprep.subr.bf16.mxu1 %v2717_v26  ;;  %v1490_v26 = vsub.s32 3, %v3455_v42 }
 0x87c   : > { %v1294_v60 = vpop.permute.xlu1 %1293 }
 0x87d   : > { %v1300_v61 = vsel %vm1299_vm6, %v1298_v59, %v1294_v60  ;;  %v2743_v60 = vld [vmem:[#allocation13 + $0x48] sm:$0xff]  }
 0x87e   : > { %v1301_v62 = vpack.c.bf16 %v1300_v61, %v1300_v61  ;;  %1665 = vmatpush1.bf16.msra.mxu1 %v2715_v28  ;;  %v2744_v61 = vld [vmem:[#allocation13 + $0xc8] sm:$0xff]  }
 0x87f   : > { %1666 = vmatprep.subr.bf16.mxu1 %v2723_v30 }
 0x880   : > { %2529 = vmatmul.mubr.bf16.vlgmr.msra.gmra.mrb[12].mxu0 %v1301_v62  ;;  %v2745_v62 = vld [vmem:[#allocation13 + $0x8] sm:$0xff]  }
 0x881   : > { %1729 = vmatprep.mubr.bf16.mxu0 %v3083_v25  ;;  %v2702_v25 = vld [vmem:[#allocation11 + $0x2c] ss:$16 sps:$4 sm:$0xff]   ;;  %1698 = vmatpush1.bf16.msra.mxu0 %v2694_v4 }
 0x882   : > { %1699 = vmatprep.subr.bf16.mxu0 %v2702_v25  ;;  %1667 = vmatpush1.bf16.msra.mxu1 %v2721_v33  ;;  %v2754_v4 = vld [vmem:[#allocation13 + $0x98] sm:$0xff]   ;;  %v2757_v25 = vld [vmem:[#allocation13 + $0x20] sm:$0xff]  }
 0x883   : > { %1668 = vmatprep.subr.bf16.mxu1 %v2729_v35 }
 0x885   : > { %1700 = vmatpush1.bf16.msra.mxu0 %v2700_v14  ;;  %v2759_v14 = vld [vmem:[#allocation13 + $0x68] sm:$0xff]  }
 0x886   : > { %1669 = vmatpush1.bf16.msra.mxu1 %v2727_v37 }
 0x887   : > { %1670 = vmatprep.subr.bf16.mxu1 %v2735_v39 }
 0x88a   : > { %1671 = vmatpush1.bf16.msra.mxu1 %v2733_v41 }
 0x88b   : > { %2400 = vmatprep.subr.bf16.mxu1 %v2739_v46 }
 0x953   : > { %v1407_v2 = vpop.f32.mrb[12].mxu0 }
 0x954   : > { %v1408_v5 = vadd.f32 %v2286_v1, %v1407_v2  ;;  %v2530_v6 = vpop.f32.mrb[13].mxu0  ;;  %v2746_v1 = vld [vmem:[#allocation13 + $0x88] sm:$0xff]   ;;  %v2747_v2 = vld [vmem:[#allocation13 + $0x50] sm:$0xff]  }
 0x955   : > { %v1410_v7 = vpop.f32.mrb[14].mxu0  ;;  %v2749_v6 = vld [vmem:[#allocation13 + $0x10] sm:$0xff]  }
 0x956   : > { %v3565_v8 = vadd.f32 %v1408_v5, %v3434_v0  ;;  %v2531_v9 = vpop.f32.mrb[15].mxu0  ;;  %v2708_v0 = vld [vmem:[#allocation11 + $0x4c] ss:$16 sps:$4 sm:$0xff]   ;;  %v2748_v5 = vld [vmem:[#allocation13 + $0xd0] sm:$0xff]  }
 0x957   : > { %1701 = vmatprep.subr.bf16.mxu0 %v2708_v0  ;;  %v2750_v7 = vld [vmem:[#allocation13 + $0x90] sm:$0xff]   ;;  %v2751_v9 = vld [vmem:[#allocation13 + $0x58] sm:$0xff]   ;;  %v2761_v0 = vld [vmem:[#allocation13 + $0x28] sm:$0xff]  }
 0x958   : > { %1416 = vadd.xlane.f32.xlu0 %v3565_v8  ;;  %1702 = vmatpush1.bf16.msra.mxu0 %v2706_v17  ;;  %v2763_v17 = vld [vmem:[#allocation13 + $0x70] sm:$0xff]  }
 0x959   : > { %1703 = vmatprep.subr.bf16.mxu0 %v2714_v23  ;;  %v2769_v23 = vld [vmem:[#allocation13 + $0x38] sm:$0xff]  }
 0x95c   : > { %1704 = vmatpush1.bf16.msra.mxu0 %v2712_v63  ;;  %v1474_v63 = vld [vmem:[%s3684_s29] sm:$0xf]  ;;  %s2995_s29 = scalar_lea.vmem %s2994_s8, 256 }
 0x95d   : > { %1705 = vmatprep.subr.bf16.mxu0 %v2720_v27  ;;  %v1479_v27 = vrot.slane %v1474_v63, %v606_v47  ;;  %v1487_v28 = vrot.slane %v1474_v63, %v614_v45  ;;  %v1491_v30 = vrot.slane %v1474_v63, %v1490_v26  ;;  %p2997_p3 = scmp.lt.s32.totalorder %s2995_s29, %s2989_s24 }
 0x95f   : > { %p2998_p2 = por %p2997_p3, %p2996_p1 }
 0x960   : > { %1706 = vmatpush1.bf16.msra.mxu0 %v2718_v29  ;;  %v1483_v29 = vrot.slane %v1474_v63, %v610_v43 }
 0x961   : > { %1707 = vmatprep.subr.bf16.mxu0 %v2726_v32  ;;  %p2999_p0 = pnand %p2998_p2, %p2992_p13 }
 0x964   : > { %1708 = vmatpush1.bf16.msra.mxu0 %v2724_v34 }
 0x965   : > { %1709 = vmatprep.subr.bf16.mxu0 %v2732_v36 }
 0x968   : > { %1710 = vmatpush1.bf16.msra.mxu0 %v2730_v38 }
 0x969   : > { %1711 = vmatprep.subr.bf16.mxu0 %v2738_v40 }
 0x96c   : > { %1712 = vmatpush1.bf16.msra.mxu0 %v2736_v44 }
 0x96d   : > { %2422 = vmatprep.subr.bf16.mxu0 %v2740_v48 }
 0x9e5   : > { %v1417_v18 = vpop.xlane.xlu0 %1416 }
 0x9e6   : > { %v1418_v19 = vmul.f32 0.0078125, %v1417_v18  ;;  %v2764_v18 = vld [vmem:[#allocation13 + $0xf0] sm:$0xff]  }
 0x9e8   : > { %v1419_v20 = vsub.f32 %v3565_v8, %v1418_v19  ;;  %v2765_v19 = vld [vmem:[#allocation13 + $0x30] sm:$0xff]  }
 0x9ea   : > { %v1420_v21 = vmul.f32 %v1419_v20, %v1419_v20 }
 0x9ec   : > { %1421 = vadd.xlane.f32.xlu1 %v1420_v21  ;;  %v2767_v21 = vld [vmem:[#allocation13 + $0x78] sm:$0xff]  }
 0xa79   : > { %v1422_v49 = vpop.xlane.xlu1 %1421 }
 0xa7a   : > { %v1423_v50 = vmul.f32 0.0078125, %v1422_v49 }
 0xa7c   : > { %v1424_v51 = vadd.f32 1e-05, %v1423_v50 }
 0xa7e   : > { %2789 = vrsqrt.f32 %v1424_v51 }
 0xa88   : > { %v2790_v52 = vpop.eup %2789 }
 0xa89   : > { %v1426_v54 = vmul.f32 %v2790_v52, %v1419_v20  ;;  %v2766_v20 = vld [vmem:[#allocation13 + $0xb0] sm:$0xff]  }
 0xa8b   : > { %v1433_v56 = vmul.f32 %v2295_v53, %v1426_v54  ;;  %v2329_v54 = vld [vmem:[%s3685_s16] ss:$0 sm:$0xff] }
 0xa8d   : > { %v1440_v57 = vadd.f32 %v2296_v55, %v1433_v56 }
 0xa8f   : > { %v1441_v59 = vpack.c.bf16 %v1440_v57, %v1440_v57 }
 0xa91   : > { %1689 = vmatmul.mubr.bf16.vlgmr.msra.gmra.mrb[28].mxu1 %v1441_v59  ;;  %1730 = vmatmul.mubr.bf16.vlgmr.msra.gmra.mrb[16].mxu0 %v1441_v59 }
 0xa92   : > { %2401 = vmatpush3.bf16.msra.mxu1 %v2741_v58  ;;  %2423 = vmatpush3.bf16.msra.mxu0 %v2742_v3 }
 0xa93   : > { %2402 = vmatprep.subr.bf16.mxu1 %v2743_v60  ;;  %2424 = vmatprep.subr.bf16.mxu0 %v2744_v61 }
 0xa96   : > { %2403 = vmatpush3.bf16.msra.mxu1 %v2745_v62  ;;  %2425 = vmatpush3.bf16.msra.mxu0 %v2746_v1 }
 0xa97   : > { %2404 = vmatprep.subr.bf16.mxu1 %v2747_v2  ;;  %2426 = vmatprep.subr.bf16.mxu0 %v2748_v5 }
 0xa9a   : > { %2405 = vmatpush3.bf16.msra.mxu1 %v2749_v6  ;;  %2427 = vmatpush3.bf16.msra.mxu0 %v2750_v7 }
 0xa9b   : > { %2406 = vmatprep.subr.bf16.mxu1 %v2751_v9  ;;  %2428 = vmatprep.subr.bf16.mxu0 %v2752_v31 }
 0xa9e   : > { %2407 = vmatpush3.bf16.msra.mxu1 %v2753_v10  ;;  %2429 = vmatpush3.bf16.msra.mxu0 %v2754_v4 }
 0xa9f   : > { %2408 = vmatprep.subr.bf16.mxu1 %v2755_v11  ;;  %2430 = vmatprep.subr.bf16.mxu0 %v2756_v12 }
 0xaa2   : > { %2409 = vmatpush3.bf16.msra.mxu1 %v2757_v25  ;;  %2431 = vmatpush3.bf16.msra.mxu0 %v2758_v13 }
 0xaa3   : > { %2410 = vmatprep.subr.bf16.mxu1 %v2759_v14  ;;  %2432 = vmatprep.subr.bf16.mxu0 %v2760_v15 }
 0xaa6   : > { %2411 = vmatpush3.bf16.msra.mxu1 %v2761_v0  ;;  %2433 = vmatpush3.bf16.msra.mxu0 %v2762_v16 }
 0xaa7   : > { %2412 = vmatprep.subr.bf16.mxu1 %v2763_v17  ;;  %2434 = vmatprep.subr.bf16.mxu0 %v2764_v18 }
 0xaaa   : > { %2413 = vmatpush3.bf16.msra.mxu1 %v2765_v19  ;;  %2435 = vmatpush3.bf16.msra.mxu0 %v2766_v20 }
 0xaab   : > { %2414 = vmatprep.subr.bf16.mxu1 %v2767_v21  ;;  %2436 = vmatprep.subr.bf16.mxu0 %v2768_v22 }
 0xaae   : > { %2415 = vmatpush3.bf16.msra.mxu1 %v2769_v23  ;;  %2437 = vmatpush3.bf16.msra.mxu0 %v2770_v24 }
 0xb64   : > { %v1690_v32 = vpop.f32.mrb[28].mxu1  ;;  %v1731_v33 = vpop.f32.mrb[16].mxu0 }
 0xb65   : > { %v1691_v34 = vadd.f32 %v1690_v32, %v1479_v27  ;;  %v1732_v35 = vadd.f32 %v1731_v33, %v1487_v28  ;;  %v1692_v36 = vpop.f32.mrb[29].mxu1  ;;  %v1733_v37 = vpop.f32.mrb[17].mxu0 }
 0xb66   : > { %v1693_v38 = vadd.f32 %v1692_v36, %v1483_v29  ;;  %v1734_v39 = vadd.f32 %v1733_v37, %v1491_v30  ;;  %v1694_v40 = vpop.f32.mrb[30].mxu1  ;;  %v1735_v41 = vpop.f32.mrb[18].mxu0 }
 0xb67   : > { %v1738_v44 = vmax.f32 %v1691_v34, 0.0  ;;  %v1740_v46 = vmax.f32 %v1732_v35, 0.0  ;;  %v1695_v47 = vpop.f32.mrb[31].mxu1  ;;  %v1736_v48 = vpop.f32.mrb[19].mxu0 }
 0xb68   : > { %v1739_v49 = vmax.f32 %v1693_v38, 0.0  ;;  %v1741_v45 = vmax.f32 %v1734_v39, 0.0 }
 0xb69   : > { %v1742_v43 = vpack.c.bf16 %v1738_v44, %v1738_v44  ;;  %v1744_v51 = vpack.c.bf16 %v1740_v46, %v1740_v46 }
 0xb6a   : > { %v1743_v50 = vpack.c.bf16 %v1739_v49, %v1739_v49  ;;  %v1745_v42 = vpack.c.bf16 %v1741_v45, %v1741_v45 }
 0xb6c   : > { %2041 = vmatprep.mubr.bf16.mxu1 %v1743_v50  ;;  %2081 = vmatprep.mubr.bf16.mxu0 %v1745_v42 }
 0xb6d   : > { %2042 = vmatmul.mubr.bf16.vlgmr.msra.gmra.mrb[32].mxu1 %v1742_v43  ;;  %2082 = vmatmul.mubr.bf16.vlgmr.msra.gmra.mrb[20].mxu0 %v1744_v51 }
 0xc40   : > { %v2416_v52 = vpop.f32.mrb[32].mxu1  ;;  %v2438_v53 = vpop.f32.mrb[20].mxu0 }
 0xc41   : > { %v2417_v55 = vpop.f32.mrb[33].mxu1  ;;  %v2439_v56 = vpop.f32.mrb[21].mxu0 }
 0xc42   : > { %v2418_v57 = vadd.f32 %v2417_v55, %v2416_v52  ;;  %v2440_v58 = vadd.f32 %v2439_v56, %v2438_v53  ;;  %v2419_v3 = vpop.f32.mrb[34].mxu1  ;;  %v2441_v59 = vpop.f32.mrb[22].mxu0 }
 0xc43   : > { %v2420_v60 = vpop.f32.mrb[35].mxu1  ;;  %v2442_v61 = vpop.f32.mrb[23].mxu0 }
 0xc44   : > { %v2044_v62 = vadd.f32 %v2418_v57, %v2329_v54 }
 0xc46   : > { %v2084_v1 = vadd.f32 %v2440_v58, %v2044_v62 }
 0xc48   : > { %v2089_v2 = vadd.f32 %v2084_v1, %v3565_v8 }
 0xc4a   : > { %2090 = vst [vmem:[%s538_s30] sm:$0xff] %v2089_v2 }
 0xc4b   : > { %3002 = shalt.err (!%p2999_p0)
}
 0xc4c   : > { %s3003_s17 = scalar_lea.hbm %s3595_s1, 128  ;;  %s3007_s16 = scalar_lea.hbm %s3686_s12, 256 }
 0xc4d   : > { %p3004_p10 = scmp.ne.s32.totalorder %s3595_s1, %s3003_s17  ;;  %p3008_p8 = scmp.lt.u32.totalorder %s3595_s1, %s3686_s12 }
 0xc4e   : > { %p3009_p5 = scmp.lt.u32.totalorder %s3007_s16, %s3003_s17  ;;  %p3011_p6 = scmp.lt.u32.totalorder %s3003_s17, %s3595_s1 }
 0xc4f   : > { %p3005_p11 = pnand %p3004_p10, %p3687_p9 }
 0xc50   : > { %p3010_p7 = por %p3009_p5, %p3008_p8 }
 0xc51   : > { %p3006_p12 = pneg %p3005_p11 }
 0xc52   : > { %p3012_p4 = por %p3011_p6, %p3010_p7 }
 0xc54   : > { %p3013_p13 = pnand %p3012_p4, %p3006_p12 }
 0xc56   : > { %3016 = shalt.err (!%p3013_p13)
}
 0xc57   : > { %2558 = dma.vmem_to_hbm [thread:$0]  (%p3687_p9), %s3597_s23, 128, %s3595_s1, %s2092_s15  }
 0xc58 PF: > { %s2117_s19 = sand.u32 1, %s3055_s25   ;;  %p3688_p1 = scmp.ne.s32.totalorder %s3673_s7, 0 }
 0xc59   : > { %p3689_p3 = scmp.ge.s32.totalorder %s3067_s28, 2  ;;  %s2118_s20 = scalar_lea.sflag [#allocation4], %s2117_s19 }
 0xc5b   : > { %p2584_p2 = pnand %p3689_p3, %p3688_p1 }
 0xc5d   : > { %3050 = dma.done.wait (!%p2584_p2), %s2118_s20, 128  }
 0xc5e   : > { %3052 = vsyncadd (!%p2584_p2), %s2118_s20, 4294967168  ;;  %p29_p0 = scmp.ge.s32.totalorder %s3336_s18, 4   ;;  %s3690_s25 = smov %s3059_s26 }
 0xc5f   : > { %s3691_s26 = smov %s3063_s27  ;;  %s3692_s27 = smov %s3347_s10 }
 0xc60   : > { %s3693_s28 = smov %s3336_s18  ;;  %31 = sbr.rel (!%p29_p0) target bundleno = 16 (0x10), region = 141 }
 0xc67   :  { %2123 = vsyncpa [#allocation3], 1 }
 0xc68   :  { %2125 = vsyncpa [#allocation3 + $0x1], 1 }
 0xc69   :  { %2126 = vsyncpa [#allocation6], 1 }
 0xc6a   :  { %2127 = vsyncpa [#allocation9], 1 }
 0xc6b   :  { %2128 = vsyncpa [#allocation12], 1 }
 0xc6c   :  { %2129 = vsyncpa [#allocation4], 1 }
 0xc6d   :  { %2131 = vsyncpa [#allocation4 + $0x1], 1 }

</bundles_post_ra>
